<compile_context>
chip_gen: v7x
topology: tpu7x:2x2x1
jax: 0.10.0
libtpu: 0.0.40
codegen_flags: <defaults>
</compile_context>

<pallas_src>
import math

import jax
import jax.numpy as jnp
import numpy as np
from jax import lax
from jax.experimental import pallas as pl
from jax.experimental.pallas import tpu as pltpu

# BetaE default projection regularizer: clamp(x + 1, 0.05, 1e9).
# TODO(synk): projection_regularizer is an arbitrary Python callable in the PyTorch module;
#             the kernel bakes in the standard BetaE Regularizer(1, 0.05, 1e9).
_REG_BASE_ADD = 1.0
_REG_MIN = 0.05
_REG_MAX = 1e9

_LANE = 128      # lane width
_SUBLANE = 16    # bf16 sublane packing


def _round_up(x, m):
    return ((x + m - 1) // m) * m


def _pad2d(a, rows, cols):
    return jnp.pad(a, ((0, rows - a.shape[0]), (0, cols - a.shape[1])))


def _make_beta_projection_kernel(num_layers, reg_min, reg_max):
    # Pre-transposed (in, out) weights: contract LHS last dim with RHS first dim ([M,K]x[K,N]).
    dn = (((1,), (0,)), ((), ()))

    def kernel(e_ref, r_ref, *refs):
        out_ref = refs[-1]
        p = refs[:-1]                 # w1e, w1r, b1, [w2, b2, ..., wL, bL], w0, b0(+1 folded)
        cdtype = p[0].dtype           # MXU operand dtype (bf16)

        # layer1: relu(concat(e, r) @ W1 + b1) == relu(e @ W1e + r @ W1r + b1)
        h = (lax.dot_general(e_ref[...].astype(cdtype), p[0][...], dn,
                             preferred_element_type=jnp.float32)
             + lax.dot_general(r_ref[...].astype(cdtype), p[1][...], dn,
                               preferred_element_type=jnp.float32)
             + p[2][...])
        h = jnp.maximum(h, 0.0)

        idx = 3
        for _ in range(2, num_layers + 1):
            w = p[idx][...]
            b = p[idx + 1][...]
            idx += 2
            h = lax.dot_general(h.astype(cdtype), w, dn,
                                preferred_element_type=jnp.float32) + b
            h = jnp.maximum(h, 0.0)

        # layer0 + regularizer (the +1 is folded into b0 at wrapper time)
        x = lax.dot_general(h.astype(cdtype), p[idx][...], dn,
                            preferred_element_type=jnp.float32) + p[idx + 1][...]
        out_ref[...] = jnp.clip(x, reg_min, reg_max).astype(out_ref.dtype)

    return kernel


def init_beta_projection_params(key, entity_dim, relation_dim, hidden_dim, num_layers,
                                dtype=jnp.bfloat16):
    """Xavier-uniform weights (PyTorch spec), default nn.Linear bias init.

    Kernel-ready layout is produced ONCE here:
      * weights transposed to (in, out), zero-padded to 128-multiples, stored in `dtype` (bf16)
      * biases stored as (1, padded_out) in f32
      * W1 split into its entity / relation row blocks (removes the in-kernel concat)
    Reference-layout f32 copies are kept under params["ref"] for testing.
    """
    ent_p = _round_up(entity_dim, _LANE)
    rel_p = _round_up(relation_dim, _LANE)
    hid_p = _round_up(hidden_dim, _LANE)

    keys = iter(jax.random.split(key, 2 * (num_layers + 1)))

    def xavier(k, fan_out, fan_in):
        bound = math.sqrt(6.0 / (fan_in + fan_out))
        return jax.random.uniform(k, (fan_out, fan_in), jnp.float32, -bound, bound)

    def bias(k, fan_in, dim):
        bound = 1.0 / math.sqrt(fan_in)
        return jax.random.uniform(k, (dim,), jnp.float32, -bound, bound)

    ref = {}
    ref["w1"] = xavier(next(keys), hidden_dim, entity_dim + relation_dim)
    ref["b1"] = bias(next(keys), entity_dim + relation_dim, hidden_dim)
    for nl in range(2, num_layers + 1):
        ref[f"w{nl}"] = xavier(next(keys), hidden_dim, hidden_dim)
        ref[f"b{nl}"] = bias(next(keys), hidden_dim, hidden_dim)
    ref["w0"] = xavier(next(keys), entity_dim, hidden_dim)
    ref["b0"] = bias(next(keys), hidden_dim, entity_dim)

    params = {"ref": ref}
    params["w1e"] = _pad2d(ref["w1"][:, :entity_dim].T, ent_p, hid_p).astype(dtype)
    params["w1r"] = _pad2d(ref["w1"][:, entity_dim:].T, rel_p, hid_p).astype(dtype)
    params["b1"] = _pad2d(ref["b1"][None, :], 1, hid_p)
    for nl in range(2, num_layers + 1):
        params[f"w{nl}"] = _pad2d(ref[f"w{nl}"].T, hid_p, hid_p).astype(dtype)
        params[f"b{nl}"] = _pad2d(ref[f"b{nl}"][None, :], 1, hid_p)
    params["w0"] = _pad2d(ref["w0"].T, hid_p, ent_p).astype(dtype)
    params["b0"] = _pad2d(ref["b0"][None, :], 1, ent_p)
    return params


def beta_projection(e_embedding, r_embedding, params, *, num_layers, tile_b=None):
    """e_embedding: (B, entity_dim), r_embedding: (B, relation_dim) -> (B, entity_dim)."""
    out_dtype = e_embedding.dtype
    b, entity_dim = e_embedding.shape
    _, relation_dim = r_embedding.shape

    ent_p, hid_p = params["w1e"].shape
    rel_p = params["w1r"].shape[0]
    out_p = params["w0"].shape[1]
    compute_dtype = params["w1e"].dtype

    # Batch tile: multiple of 16 sublanes (bf16 packing); 256/512 MXU-M rows for large B.
    if tile_b is None:
        if b <= 512:
            tile_b = _round_up(b, _SUBLANE)      # single grid step, minimal padding
        elif b >= 4096:
            tile_b = 512
        else:
            tile_b = 256
    tile_b = max(_SUBLANE, _round_up(tile_b, _SUBLANE))
    bp = _round_up(b, tile_b)
    grid = (bp // tile_b,)

    # Pad (batch + feature) and cast activations once, outside the kernel.
    e_p = jnp.pad(e_embedding.astype(compute_dtype), ((0, bp - b), (0, ent_p - entity_dim)))
    r_p = jnp.pad(r_embedding.astype(compute_dtype), ((0, bp - b), (0, rel_p - relation_dim)))

    # Ordered parameter list matching the kernel signature; fold the regularizer's +1 into b0.
    plist = [params["w1e"], params["w1r"], params["b1"]]
    for nl in range(2, num_layers + 1):
        plist += [params[f"w{nl}"], params[f"b{nl}"]]
    plist += [params["w0"], params["b0"] + jnp.float32(_REG_BASE_ADD)]

    param_bytes = sum(int(pp.size) * pp.dtype.itemsize for pp in plist)
    act_bytes = 2 * tile_b * ((ent_p + rel_p) * jnp.dtype(compute_dtype).itemsize
                              + out_p * jnp.dtype(out_dtype).itemsize)
    # Budget: params (x2 in case single-buffering is unavailable) + double-buffered activation
    # tiles + 25% headroom, clamped to [32 MiB, 64 MiB] so it is legal on every generation.
    vmem_limit = int(min(64 * 1024 * 1024,
                         max(32 * 1024 * 1024, int(1.25 * (2 * param_bytes + 2 * act_bytes)))))

    flops = 2 * bp * (ent_p * hid_p + rel_p * hid_p
                      + (num_layers - 1) * hid_p * hid_p + hid_p * out_p)
    bytes_accessed = (int(e_p.size) * e_p.dtype.itemsize
                      + int(r_p.size) * r_p.dtype.itemsize
                      + param_bytes
                      + bp * out_p * jnp.dtype(out_dtype).itemsize)
    cost = pl.CostEstimate(flops=flops, transcendentals=0, bytes_accessed=bytes_accessed)

    kernel = _make_beta_projection_kernel(num_layers, _REG_MIN, _REG_MAX)

    def run(single_buffer_params):
        # Constant index_maps keep weights/biases VMEM-resident; Buffered(1) drops the second
        # (useless) buffer so the resident footprint is halved.
        extra = {"pipeline_mode": pl.Buffered(1)} if single_buffer_params else {}
        param_specs = [pl.BlockSpec(pp.shape, lambda i: (0, 0), **extra) for pp in plist]
        return pl.pallas_call(
            kernel,
            out_shape=jax.ShapeDtypeStruct((bp, out_p), out_dtype),
            grid=grid,
            in_specs=[
                pl.BlockSpec((tile_b, ent_p), lambda i: (i, 0)),
                pl.BlockSpec((tile_b, rel_p), lambda i: (i, 0)),
                *param_specs,
            ],
            out_specs=pl.BlockSpec((tile_b, out_p), lambda i: (i, 0)),
            compiler_params=pltpu.CompilerParams(
                dimension_semantics=("parallel",),     # batch grid shards across v7x's 2 TCs
                vmem_limit_bytes=vmem_limit),
            cost_estimate=cost,
        )(e_p, r_p, *plist)

    try:
        out = run(single_buffer_params=True)
    except Exception:
        # Fallback if pl.Buffered(1) is rejected by the installed Pallas version.
        out = run(single_buffer_params=False)

    return out[:b, :entity_dim]


# ---------------------------------------------------------------------------
# References for testing
# ---------------------------------------------------------------------------

def _reference_f32(e, r, ref, num_layers):
    """Exact PyTorch-module semantics in f32 (unpadded weights)."""
    x = jnp.concatenate([e, r], axis=-1)
    x = jax.nn.relu(jnp.dot(x, ref["w1"].T, precision="highest") + ref["b1"])
    for nl in range(2, num_layers + 1):
        x = jax.nn.relu(jnp.dot(x, ref[f"w{nl}"].T, precision="highest") + ref[f"b{nl}"])
    x = jnp.dot(x, ref["w0"].T, precision="highest") + ref["b0"]
    return jnp.clip(x + _REG_BASE_ADD, _REG_MIN, _REG_MAX)


def _reference_mirrored(e, r, params, num_layers):
    """Pure-jnp mirror of the kernel math (same bf16 rounding points, f32 accumulation)."""
    cd = params["w1e"].dtype
    ent_p = params["w1e"].shape[0]
    rel_p = params["w1r"].shape[0]
    entity_dim = e.shape[1]
    ep = jnp.pad(e.astype(cd), ((0, 0), (0, ent_p - e.shape[1]))).astype(jnp.float32)
    rp = jnp.pad(r.astype(cd), ((0, 0), (0, rel_p - r.shape[1]))).astype(jnp.float32)

    def mm(a, w):
        return jnp.dot(a, w.astype(jnp.float32), precision="highest")

    h = mm(ep, params["w1e"]) + mm(rp, params["w1r"]) + params["b1"]
    h = jnp.maximum(h, 0.0)
    for nl in range(2, num_layers + 1):
        h = jnp.maximum(mm(h.astype(cd).astype(jnp.float32), params[f"w{nl}"])
                        + params[f"b{nl}"], 0.0)
    x = mm(h.astype(cd).astype(jnp.float32), params["w0"]) + params["b0"] + _REG_BASE_ADD
    return jnp.clip(x, _REG_MIN, _REG_MAX)[:, :entity_dim]


if __name__ == "__main__":
    # Small test shapes; feature dims are padded to 128 inside init, so the kernel always sees
    # lane-dense (…, 128) blocks regardless of the logical BetaE dims.
    batch, entity_dim, relation_dim, hidden_dim, num_layers = 20, 32, 32, 64, 2

    key = jax.random.PRNGKey(0)
    k_e, k_r, k_p = jax.random.split(key, 3)
    e = jax.random.normal(k_e, (batch, entity_dim), jnp.float32)
    r = jax.random.normal(k_r, (batch, relation_dim), jnp.float32)
    params = init_beta_projection_params(k_p, entity_dim, relation_dim, hidden_dim, num_layers)

    # tile_b=16 with batch=20 exercises the grid (2 steps) and the batch/feature padding paths.
    out = beta_projection(e, r, params, num_layers=num_layers, tile_b=16)
    out = jax.block_until_ready(out)
    assert out.shape == (batch, entity_dim)

    # Tight check vs. a bf16-aware mirror of the kernel math.
    mirrored = _reference_mirrored(e, r, params, num_layers)
    np.testing.assert_allclose(np.asarray(out), np.asarray(mirrored), rtol=5e-3, atol=5e-3)

    # Loose check vs. the exact f32 module semantics (difference is bf16 quantization only).
    full = _reference_f32(e, r, params["ref"], num_layers)
    np.testing.assert_allclose(np.asarray(out), np.asarray(full), rtol=6e-2, atol=6e-2)

    print("KERNEL_OK")
</pallas_src>

<mosaic_0001>
module attributes {stable_mosaic.version = 11 : i64} {
  func.func @kernel(%arg0: i32, %arg1: memref<16x128xbf16, #tpu.memory_space<vmem>>, %arg2: memref<16x128xbf16, #tpu.memory_space<vmem>>, %arg3: memref<128x128xbf16, #tpu.memory_space<vmem>>, %arg4: memref<128x128xbf16, #tpu.memory_space<vmem>>, %arg5: memref<1x128xf32, #tpu.memory_space<vmem>>, %arg6: memref<128x128xbf16, #tpu.memory_space<vmem>>, %arg7: memref<1x128xf32, #tpu.memory_space<vmem>>, %arg8: memref<128x128xbf16, #tpu.memory_space<vmem>>, %arg9: memref<1x128xf32, #tpu.memory_space<vmem>>, %arg10: memref<16x128xf32, #tpu.memory_space<vmem>>) attributes {dimension_semantics = [#tpu.dimension_semantics<parallel>], iteration_bounds = array<i64: 2>, scalar_prefetch = 0 : i64, scratch_operands = 0 : i64, tpu.core_type = #tpu.core_type<tc>, window_params = [{transform_indices = @transform_0, window_bounds = array<i64: 16, 128>}, {transform_indices = @transform_1, window_bounds = array<i64: 16, 128>}, {pipeline_mode = #tpu.pipeline_mode<synchronous>, transform_indices = @transform_2, window_bounds = array<i64: 128, 128>}, {pipeline_mode = #tpu.pipeline_mode<synchronous>, transform_indices = @transform_3, window_bounds = array<i64: 128, 128>}, {pipeline_mode = #tpu.pipeline_mode<synchronous>, transform_indices = @transform_4, window_bounds = array<i64: 1, 128>}, {pipeline_mode = #tpu.pipeline_mode<synchronous>, transform_indices = @transform_5, window_bounds = array<i64: 128, 128>}, {pipeline_mode = #tpu.pipeline_mode<synchronous>, transform_indices = @transform_6, window_bounds = array<i64: 1, 128>}, {pipeline_mode = #tpu.pipeline_mode<synchronous>, transform_indices = @transform_7, window_bounds = array<i64: 128, 128>}, {pipeline_mode = #tpu.pipeline_mode<synchronous>, transform_indices = @transform_8, window_bounds = array<i64: 1, 128>}, {transform_indices = @transform_9, window_bounds = array<i64: 16, 128>}]} {
    %c0 = arith.constant 0 : index
    %c0_0 = arith.constant 0 : index
    %0 = vector.load %arg1[%c0, %c0_0] : memref<16x128xbf16, #tpu.memory_space<vmem>>, vector<16x128xbf16>
    %c0_1 = arith.constant 0 : index
    %c0_2 = arith.constant 0 : index
    %1 = vector.load %arg3[%c0_1, %c0_2] : memref<128x128xbf16, #tpu.memory_space<vmem>>, vector<128x128xbf16>
    %cst = arith.constant dense<0.000000e+00> : vector<16x128xf32>
    %2 = tpu.matmul %0, %1, %cst {dimension_numbers = #tpu.dot_dimension_numbers<[1], [0], [0], [1], [0, 0, 1, 1], [], []>} : vector<16x128xbf16>, vector<128x128xbf16>, vector<16x128xf32> -> vector<16x128xf32>
    %c0_3 = arith.constant 0 : index
    %c0_4 = arith.constant 0 : index
    %3 = vector.load %arg2[%c0_3, %c0_4] : memref<16x128xbf16, #tpu.memory_space<vmem>>, vector<16x128xbf16>
    %c0_5 = arith.constant 0 : index
    %c0_6 = arith.constant 0 : index
    %4 = vector.load %arg4[%c0_5, %c0_6] : memref<128x128xbf16, #tpu.memory_space<vmem>>, vector<128x128xbf16>
    %cst_7 = arith.constant dense<0.000000e+00> : vector<16x128xf32>
    %5 = tpu.matmul %3, %4, %cst_7 {dimension_numbers = #tpu.dot_dimension_numbers<[1], [0], [0], [1], [0, 0, 1, 1], [], []>} : vector<16x128xbf16>, vector<128x128xbf16>, vector<16x128xf32> -> vector<16x128xf32>
    %6 = arith.addf %2, %5 : vector<16x128xf32>
    %c0_8 = arith.constant 0 : index
    %c0_9 = arith.constant 0 : index
    %7 = vector.load %arg5[%c0_8, %c0_9] : memref<1x128xf32, #tpu.memory_space<vmem>>, vector<1x128xf32>
    %8 = vector.broadcast %7 : vector<1x128xf32> to vector<16x128xf32>
    %9 = arith.addf %6, %8 : vector<16x128xf32>
    %cst_10 = arith.constant 0.000000e+00 : f32
    %10 = vector.broadcast %cst_10 : f32 to vector<16x128xf32>
    %11 = arith.maximumf %9, %10 : vector<16x128xf32>
    %c0_11 = arith.constant 0 : index
    %c0_12 = arith.constant 0 : index
    %12 = vector.load %arg6[%c0_11, %c0_12] : memref<128x128xbf16, #tpu.memory_space<vmem>>, vector<128x128xbf16>
    %c0_13 = arith.constant 0 : index
    %c0_14 = arith.constant 0 : index
    %13 = vector.load %arg7[%c0_13, %c0_14] : memref<1x128xf32, #tpu.memory_space<vmem>>, vector<1x128xf32>
    %14 = arith.truncf %11 : vector<16x128xf32> to vector<16x128xbf16>
    %cst_15 = arith.constant dense<0.000000e+00> : vector<16x128xf32>
    %15 = tpu.matmul %14, %12, %cst_15 {dimension_numbers = #tpu.dot_dimension_numbers<[1], [0], [0], [1], [0, 0, 1, 1], [], []>} : vector<16x128xbf16>, vector<128x128xbf16>, vector<16x128xf32> -> vector<16x128xf32>
    %16 = vector.broadcast %13 : vector<1x128xf32> to vector<16x128xf32>
    %17 = arith.addf %15, %16 : vector<16x128xf32>
    %cst_16 = arith.constant 0.000000e+00 : f32
    %18 = vector.broadcast %cst_16 : f32 to vector<16x128xf32>
    %19 = arith.maximumf %17, %18 : vector<16x128xf32>
    %20 = arith.truncf %19 : vector<16x128xf32> to vector<16x128xbf16>
    %c0_17 = arith.constant 0 : index
    %c0_18 = arith.constant 0 : index
    %21 = vector.load %arg8[%c0_17, %c0_18] : memref<128x128xbf16, #tpu.memory_space<vmem>>, vector<128x128xbf16>
    %cst_19 = arith.constant dense<0.000000e+00> : vector<16x128xf32>
    %22 = tpu.matmul %20, %21, %cst_19 {dimension_numbers = #tpu.dot_dimension_numbers<[1], [0], [0], [1], [0, 0, 1, 1], [], []>} : vector<16x128xbf16>, vector<128x128xbf16>, vector<16x128xf32> -> vector<16x128xf32>
    %c0_20 = arith.constant 0 : index
    %c0_21 = arith.constant 0 : index
    %23 = vector.load %arg9[%c0_20, %c0_21] : memref<1x128xf32, #tpu.memory_space<vmem>>, vector<1x128xf32>
    %24 = vector.broadcast %23 : vector<1x128xf32> to vector<16x128xf32>
    %25 = arith.addf %22, %24 : vector<16x128xf32>
    %cst_22 = arith.constant 5.000000e-02 : f32
    %cst_23 = arith.constant 1.000000e+09 : f32
    %26 = vector.broadcast %cst_22 : f32 to vector<16x128xf32>
    %27 = arith.maximumf %26, %25 : vector<16x128xf32>
    %28 = vector.broadcast %cst_23 : f32 to vector<16x128xf32>
    %29 = arith.minimumf %28, %27 : vector<16x128xf32>
    %c0_24 = arith.constant 0 : index
    %c0_25 = arith.constant 0 : index
    %30 = vector.load %arg10[%c0_24, %c0_25] : memref<16x128xf32, #tpu.memory_space<vmem>>, vector<16x128xf32>
    tpu.vector_store %arg10[%c0_24, %c0_25], %29 {strides = array<i32>} : memref<16x128xf32, #tpu.memory_space<vmem>>, vector<16x128xf32>,
    return
  }
  func.func @transform_0(%arg0: i32) -> (i32, i32) {
    %c0_i32 = arith.constant 0 : i32
    %c0_i32_0 = arith.constant 0 : i32
    return %arg0, %c0_i32 : i32, i32
  }
  func.func @transform_1(%arg0: i32) -> (i32, i32) {
    %c0_i32 = arith.constant 0 : i32
    %c0_i32_0 = arith.constant 0 : i32
    return %arg0, %c0_i32 : i32, i32
  }
  func.func @transform_2(%arg0: i32) -> (i32, i32) {
    %c0_i32 = arith.constant 0 : i32
    %c0_i32_0 = arith.constant 0 : i32
    %c0_i32_1 = arith.constant 0 : i32
    return %c0_i32, %c0_i32_0 : i32, i32
  }
  func.func @transform_3(%arg0: i32) -> (i32, i32) {
    %c0_i32 = arith.constant 0 : i32
    %c0_i32_0 = arith.constant 0 : i32
    %c0_i32_1 = arith.constant 0 : i32
    return %c0_i32, %c0_i32_0 : i32, i32
  }
  func.func @transform_4(%arg0: i32) -> (i32, i32) {
    %c0_i32 = arith.constant 0 : i32
    %c0_i32_0 = arith.constant 0 : i32
    %c0_i32_1 = arith.constant 0 : i32
    return %c0_i32, %c0_i32_0 : i32, i32
  }
  func.func @transform_5(%arg0: i32) -> (i32, i32) {
    %c0_i32 = arith.constant 0 : i32
    %c0_i32_0 = arith.constant 0 : i32
    %c0_i32_1 = arith.constant 0 : i32
    return %c0_i32, %c0_i32_0 : i32, i32
  }
  func.func @transform_6(%arg0: i32) -> (i32, i32) {
    %c0_i32 = arith.constant 0 : i32
    %c0_i32_0 = arith.constant 0 : i32
    %c0_i32_1 = arith.constant 0 : i32
    return %c0_i32, %c0_i32_0 : i32, i32
  }
  func.func @transform_7(%arg0: i32) -> (i32, i32) {
    %c0_i32 = arith.constant 0 : i32
    %c0_i32_0 = arith.constant 0 : i32
    %c0_i32_1 = arith.constant 0 : i32
    return %c0_i32, %c0_i32_0 : i32, i32
  }
  func.func @transform_8(%arg0: i32) -> (i32, i32) {
    %c0_i32 = arith.constant 0 : i32
    %c0_i32_0 = arith.constant 0 : i32
    %c0_i32_1 = arith.constant 0 : i32
    return %c0_i32, %c0_i32_0 : i32, i32
  }
  func.func @transform_9(%arg0: i32) -> (i32, i32) {
    %c0_i32 = arith.constant 0 : i32
    %c0_i32_0 = arith.constant 0 : i32
    return %arg0, %c0_i32 : i32, i32
  }
}

module attributes {stable_mosaic.version = 11 : i64} {
  func.func @kernel(%arg0: i32, %arg1: memref<16x128xbf16, #tpu.memory_space<vmem>>, %arg2: memref<16x128xbf16, #tpu.memory_space<vmem>>, %arg3: memref<128x128xbf16, #tpu.memory_space<vmem>>, %arg4: memref<128x128xbf16, #tpu.memory_space<vmem>>, %arg5: memref<1x128xf32, #tpu.memory_space<vmem>>, %arg6: memref<128x128xbf16, #tpu.memory_space<vmem>>, %arg7: memref<1x128xf32, #tpu.memory_space<vmem>>, %arg8: memref<128x128xbf16, #tpu.memory_space<vmem>>, %arg9: memref<1x128xf32, #tpu.memory_space<vmem>>, %arg10: memref<16x128xf32, #tpu.memory_space<vmem>>) attributes {dimension_semantics = [#tpu.dimension_semantics<parallel>], iteration_bounds = array<i64: 2>, scalar_prefetch = 0 : i64, scratch_operands = 0 : i64, tpu.core_type = #tpu.core_type<tc>, window_params = [{transform_indices = @transform_0, window_bounds = array<i64: 16, 128>}, {transform_indices = @transform_1, window_bounds = array<i64: 16, 128>}, {pipeline_mode = #tpu.pipeline_mode<synchronous>, transform_indices = @transform_2, window_bounds = array<i64: 128, 128>}, {pipeline_mode = #tpu.pipeline_mode<synchronous>, transform_indices = @transform_3, window_bounds = array<i64: 128, 128>}, {pipeline_mode = #tpu.pipeline_mode<synchronous>, transform_indices = @transform_4, window_bounds = array<i64: 1, 128>}, {pipeline_mode = #tpu.pipeline_mode<synchronous>, transform_indices = @transform_5, window_bounds = array<i64: 128, 128>}, {pipeline_mode = #tpu.pipeline_mode<synchronous>, transform_indices = @transform_6, window_bounds = array<i64: 1, 128>}, {pipeline_mode = #tpu.pipeline_mode<synchronous>, transform_indices = @transform_7, window_bounds = array<i64: 128, 128>}, {pipeline_mode = #tpu.pipeline_mode<synchronous>, transform_indices = @transform_8, window_bounds = array<i64: 1, 128>}, {transform_indices = @transform_9, window_bounds = array<i64: 16, 128>}]} {
    %c0 = arith.constant 0 : index
    %c0_0 = arith.constant 0 : index
    %0 = vector.load %arg1[%c0, %c0_0] : memref<16x128xbf16, #tpu.memory_space<vmem>>, vector<16x128xbf16>
    %c0_1 = arith.constant 0 : index
    %c0_2 = arith.constant 0 : index
    %1 = vector.load %arg3[%c0_1, %c0_2] : memref<128x128xbf16, #tpu.memory_space<vmem>>, vector<128x128xbf16>
    %cst = arith.constant dense<0.000000e+00> : vector<16x128xf32>
    %2 = tpu.matmul %0, %1, %cst {dimension_numbers = #tpu.dot_dimension_numbers<[1], [0], [0], [1], [0, 0, 1, 1], [], []>} : vector<16x128xbf16>, vector<128x128xbf16>, vector<16x128xf32> -> vector<16x128xf32>
    %c0_3 = arith.constant 0 : index
    %c0_4 = arith.constant 0 : index
    %3 = vector.load %arg2[%c0_3, %c0_4] : memref<16x128xbf16, #tpu.memory_space<vmem>>, vector<16x128xbf16>
    %c0_5 = arith.constant 0 : index
    %c0_6 = arith.constant 0 : index
    %4 = vector.load %arg4[%c0_5, %c0_6] : memref<128x128xbf16, #tpu.memory_space<vmem>>, vector<128x128xbf16>
    %cst_7 = arith.constant dense<0.000000e+00> : vector<16x128xf32>
    %5 = tpu.matmul %3, %4, %cst_7 {dimension_numbers = #tpu.dot_dimension_numbers<[1], [0], [0], [1], [0, 0, 1, 1], [], []>} : vector<16x128xbf16>, vector<128x128xbf16>, vector<16x128xf32> -> vector<16x128xf32>
    %6 = arith.addf %2, %5 : vector<16x128xf32>
    %c0_8 = arith.constant 0 : index
    %c0_9 = arith.constant 0 : index
    %7 = vector.load %arg5[%c0_8, %c0_9] : memref<1x128xf32, #tpu.memory_space<vmem>>, vector<1x128xf32>
    %8 = vector.broadcast %7 : vector<1x128xf32> to vector<16x128xf32>
    %9 = arith.addf %6, %8 : vector<16x128xf32>
    %cst_10 = arith.constant 0.000000e+00 : f32
    %10 = vector.broadcast %cst_10 : f32 to vector<16x128xf32>
    %11 = arith.maximumf %9, %10 : vector<16x128xf32>
    %c0_11 = arith.constant 0 : index
    %c0_12 = arith.constant 0 : index
    %12 = vector.load %arg6[%c0_11, %c0_12] : memref<128x128xbf16, #tpu.memory_space<vmem>>, vector<128x128xbf16>
    %c0_13 = arith.constant 0 : index
    %c0_14 = arith.constant 0 : index
    %13 = vector.load %arg7[%c0_13, %c0_14] : memref<1x128xf32, #tpu.memory_space<vmem>>, vector<1x128xf32>
    %14 = arith.truncf %11 : vector<16x128xf32> to vector<16x128xbf16>
    %cst_15 = arith.constant dense<0.000000e+00> : vector<16x128xf32>
    %15 = tpu.matmul %14, %12, %cst_15 {dimension_numbers = #tpu.dot_dimension_numbers<[1], [0], [0], [1], [0, 0, 1, 1], [], []>} : vector<16x128xbf16>, vector<128x128xbf16>, vector<16x128xf32> -> vector<16x128xf32>
    %16 = vector.broadcast %13 : vector<1x128xf32> to vector<16x128xf32>
    %17 = arith.addf %15, %16 : vector<16x128xf32>
    %cst_16 = arith.constant 0.000000e+00 : f32
    %18 = vector.broadcast %cst_16 : f32 to vector<16x128xf32>
    %19 = arith.maximumf %17, %18 : vector<16x128xf32>
    %20 = arith.truncf %19 : vector<16x128xf32> to vector<16x128xbf16>
    %c0_17 = arith.constant 0 : index
    %c0_18 = arith.constant 0 : index
    %21 = vector.load %arg8[%c0_17, %c0_18] : memref<128x128xbf16, #tpu.memory_space<vmem>>, vector<128x128xbf16>
    %cst_19 = arith.constant dense<0.000000e+00> : vector<16x128xf32>
    %22 = tpu.matmul %20, %21, %cst_19 {dimension_numbers = #tpu.dot_dimension_numbers<[1], [0], [0], [1], [0, 0, 1, 1], [], []>} : vector<16x128xbf16>, vector<128x128xbf16>, vector<16x128xf32> -> vector<16x128xf32>
    %c0_20 = arith.constant 0 : index
    %c0_21 = arith.constant 0 : index
    %23 = vector.load %arg9[%c0_20, %c0_21] : memref<1x128xf32, #tpu.memory_space<vmem>>, vector<1x128xf32>
    %24 = vector.broadcast %23 : vector<1x128xf32> to vector<16x128xf32>
    %25 = arith.addf %22, %24 : vector<16x128xf32>
    %cst_22 = arith.constant 5.000000e-02 : f32
    %cst_23 = arith.constant 1.000000e+09 : f32
    %26 = vector.broadcast %cst_22 : f32 to vector<16x128xf32>
    %27 = arith.maximumf %26, %25 : vector<16x128xf32>
    %28 = vector.broadcast %cst_23 : f32 to vector<16x128xf32>
    %29 = arith.minimumf %28, %27 : vector<16x128xf32>
    %c0_24 = arith.constant 0 : index
    %c0_25 = arith.constant 0 : index
    %30 = vector.load %arg10[%c0_24, %c0_25] : memref<16x128xf32, #tpu.memory_space<vmem>>, vector<16x128xf32>
    tpu.vector_store %arg10[%c0_24, %c0_25], %29 {strides = array<i32>} : memref<16x128xf32, #tpu.memory_space<vmem>>, vector<16x128xf32>,
    return
  }
  func.func @transform_0(%arg0: i32) -> (i32, i32) {
    %c0_i32 = arith.constant 0 : i32
    %c0_i32_0 = arith.constant 0 : i32
    return %arg0, %c0_i32 : i32, i32
  }
  func.func @transform_1(%arg0: i32) -> (i32, i32) {
    %c0_i32 = arith.constant 0 : i32
    %c0_i32_0 = arith.constant 0 : i32
    return %arg0, %c0_i32 : i32, i32
  }
  func.func @transform_2(%arg0: i32) -> (i32, i32) {
    %c0_i32 = arith.constant 0 : i32
    %c0_i32_0 = arith.constant 0 : i32
    %c0_i32_1 = arith.constant 0 : i32
    return %c0_i32, %c0_i32_0 : i32, i32
  }
  func.func @transform_3(%arg0: i32) -> (i32, i32) {
    %c0_i32 = arith.constant 0 : i32
    %c0_i32_0 = arith.constant 0 : i32
    %c0_i32_1 = arith.constant 0 : i32
    return %c0_i32, %c0_i32_0 : i32, i32
  }
  func.func @transform_4(%arg0: i32) -> (i32, i32) {
    %c0_i32 = arith.constant 0 : i32
    %c0_i32_0 = arith.constant 0 : i32
    %c0_i32_1 = arith.constant 0 : i32
    return %c0_i32, %c0_i32_0 : i32, i32
  }
  func.func @transform_5(%arg0: i32) -> (i32, i32) {
    %c0_i32 = arith.constant 0 : i32
    %c0_i32_0 = arith.constant 0 : i32
    %c0_i32_1 = arith.constant 0 : i32
    return %c0_i32, %c0_i32_0 : i32, i32
  }
  func.func @transform_6(%arg0: i32) -> (i32, i32) {
    %c0_i32 = arith.constant 0 : i32
    %c0_i32_0 = arith.constant 0 : i32
    %c0_i32_1 = arith.constant 0 : i32
    return %c0_i32, %c0_i32_0 : i32, i32
  }
  func.func @transform_7(%arg0: i32) -> (i32, i32) {
    %c0_i32 = arith.constant 0 : i32
    %c0_i32_0 = arith.constant 0 : i32
    %c0_i32_1 = arith.constant 0 : i32
    return %c0_i32, %c0_i32_0 : i32, i32
  }
  func.func @transform_8(%arg0: i32) -> (i32, i32) {
    %c0_i32 = arith.constant 0 : i32
    %c0_i32_0 = arith.constant 0 : i32
    %c0_i32_1 = arith.constant 0 : i32
    return %c0_i32, %c0_i32_0 : i32, i32
  }
  func.func @transform_9(%arg0: i32) -> (i32, i32) {
    %c0_i32 = arith.constant 0 : i32
    %c0_i32_0 = arith.constant 0 : i32
    return %arg0, %c0_i32 : i32, i32
  }
}

</mosaic_0001>

<bundles_post_ra>
// kernel: tpu_custom_call.1
= control target key start
LH: loop header
LB: loop body
LE: loop exit
PB: predicated region body
PF: predicated region fallthrough
CT: control target
= control target key end

     0   :  { %s2102_s0 = inlined_call_operand.hbm [shape: bf16[32,128], index: 0, kind: input, shape index: {}]   ;;  %s2103_s1 = inlined_call_operand.hbm [shape: bf16[32,128], index: 1, kind: input, shape index: {}]   ;;  %s2104_s2 = inlined_call_operand.hbm [shape: bf16[128,128], index: 2, kind: input, shape index: {}]   ;;  %s2105_s3 = inlined_call_operand.hbm [shape: bf16[128,128], index: 3, kind: input, shape index: {}]   ;;  %s2106_s4 = inlined_call_operand.vmem [shape: f32[1,128], index: 4, kind: input, shape index: {}]   ;;  %s2107_s5 = inlined_call_operand.hbm [shape: bf16[128,128], index: 5, kind: input, shape index: {}]   ;;  %s2108_s6 = inlined_call_operand.vmem [shape: f32[1,128], index: 6, kind: input, shape index: {}]   ;;  %s2109_s7 = inlined_call_operand.hbm [shape: bf16[128,128], index: 7, kind: input, shape index: {}]   ;;  %s2110_s8 = inlined_call_operand.vmem [shape: f32[1,128], index: 8, kind: input, shape index: {}]   ;;  %s2111_s9 = inlined_call_operand.hbm [shape: f32[32,128], index: 9, kind: output, shape index: {}]  }
   0x1   :  { %2122 = sst [smem:[#allocation22_spill]] %s2102_s0 }
   0x2   :  { %2123 = sst [smem:[#allocation23_spill]] %s2104_s2 }
   0x3   :  { %2124 = sst [smem:[#allocation24_spill]] %s2105_s3 }
   0x4   :  { %2125 = sst [smem:[#allocation25_spill]] %s2111_s9 }
   0x5   :  { %14 = vsyncpa [#allocation3], 0 }
   0x6   :  { %16 = vsyncpa [#allocation3 + $0x1], 0 }
   0x7   :  { %17 = vsyncpa [#allocation6], 0 }
   0x8   :  { %19 = vsyncpa [#allocation6 + $0x1], 0 }
   0x9   :  { %20 = vsyncpa [#allocation9], 0 }
   0xa   :  { %21 = vsyncpa [#allocation12], 0 }
   0xb   :  { %22 = vsyncpa [#allocation4], 0 }
   0xc   :  { %24 = vsyncpa [#allocation4 + $0x1], 0  ;;  %s1705_s30 = smov 0   ;;  %s1707_s10 = smov 0  }
   0xd   :  { %s1709_s11 = smov 0   ;;  %s1711_s12 = smov 0  }
   0xe LB: > { %2126 = sst [smem:[#allocation20_spill]] %s1628_s30  ;;  %s1726_s13 = sadd.s32 4294967295, %s1640_s12   ;;  %s1640_s12 = sphi %s1711_s12, %s2157_s12   ;;  %s1636_s11 = sphi %s1709_s11, %s2156_s11   ;;  %s1632_s10 = sphi %s1707_s10, %s2155_s10   ;;  %s1628_s30 = sphi %s1705_s30, %s2154_s30  }
   0xf   : > { %s1072_s14 = sadd.s32 4294967294, %s1640_s12   ;;  %p50_p0 = scmp.ne.s32.totalorder %s1632_s10, %s1628_s30 }
  0x10   : > { %p2112_p1 = scmp.eq.s32.totalorder %s1726_s13, 0  ;;  %p253_p3 = scmp.eq.s32.totalorder %s1072_s14, 1 }
  0x11   : > { %p1073_p5 = scmp.ge.s32.totalorder %s1640_s12, 1  ;;  %p260_p7 = scmp.lt.s32.totalorder %s1640_s12, 3 }
  0x12   : > { %p1735_p4 = por %p2112_p1, %p50_p0  ;;  %p1740_p6 = por %p253_p3, %p50_p0 }
  0x13   : > { %p1745_p8 = pnand %p1073_p5, %p260_p7  ;;  %s1642_s18 = smov [#allocation7]  }
  0x14   : > { %s2127_s15 = scalar_select %p1735_p4, 1, 0 }
  0x15   : > { %s2128_s16 = scalar_select %p1740_p6, 1, 0 }
  0x16   : > { %s2130_s17 = scalar_select %p1745_p8, 1, 0 }
  0x17   : > { %2129 = sst [smem:[#allocation21_spill]] %s2128_s16  ;;  %s272_s19 = sshll.u32 %s1642_s18, 4  ;;  %s1749_s19 = int_to_ptr.vmem [resolvable:$true] %s272_s19 }
  0x18   : > { %p1276_p9 = pneg %p1745_p8  ;;  %s1643_s21 = smov [#allocation8]  }
  0x19   : > { %s285_s22 = sshll.u32 %s1643_s21, 4  ;;  %s1644_s23 = smov [#allocation10]   ;;  %s1760_s22 = int_to_ptr.vmem [resolvable:$true] %s285_s22 }
  0x1a   : > { %p1756_p11 = pnand %p1276_p9, %p2112_p1  ;;  %s1762_s24 = sshll.u32 %s1644_s23, 4  ;;  %s302_s24 = int_to_ptr.vmem [resolvable:$true] %s1762_s24 }
  0x1b   : > { %s2132_s2 = sld [smem:[#allocation23_spill]] }
  0x1c   : > { %p1772_p13 = pneg %p1756_p11 }
  0x21   : > { %s1386_s27 = scalar_lea.hbm %s2132_s2, 1024 }
  0x22   : > { %p1387_p12 = scmp.ne.s32.totalorder %s2132_s2, %s1386_s27  ;;  %p1393_p5 = scmp.lt.u32.totalorder %s1386_s27, %s2132_s2 }
  0x24   : > { %p1389_p0 = pnand %p1772_p13, %p1387_p12 }
  0x26   : > { %p1390_p3 = pneg %p1389_p0 }
  0x28   : > { %p1395_p7 = pnand %p1393_p5, %p1390_p3 }
  0x2a   : > { %1398 = shalt.err (!%p1395_p7)
}
  0x2b   : > { %s1399_s23 = scalar_lea.vmem %s1749_s19, 1024  ;;  %p1407_p2 = scmp.lt.s32.totalorder %s1749_s19, %s1749_s19 }
  0x2c   : > { %p1400_p9 = scmp.ne.s32.totalorder %s1749_s19, %s1399_s23  ;;  %p1408_p6 = scmp.lt.s32.totalorder %s1399_s23, %s1399_s23 }
  0x2e   : > { %p1402_p10 = pnand %p1400_p9, %p1772_p13  ;;  %p1409_p12 = por %p1408_p6, %p1407_p2 }
  0x30   : > { %p1403_p1 = pneg %p1402_p10 }
  0x32   : > { %p1410_p0 = pnand %p1409_p12, %p1403_p1 }
  0x34   : > { %1413 = shalt.err (!%p1410_p0)
}
  0x35   : > { %s2118_s25 = smov 64   ;;  %s2120_s26 = smov 4  }
  0x36   : > { %1279 = dma.hbm_to_vmem [thread:$0]  (!%p1756_p11), %s2132_s2, 1024, %s1749_s19, [#allocation6], %s2118_s25, %s2118_s25, %s2120_s26  }
  0x37   : > { %s2134_s3 = sld [smem:[#allocation24_spill]] }
  0x3d   : > { %s1414_s21 = scalar_lea.hbm %s2134_s3, 1024 }
  0x3e   : > { %p1415_p1 = scmp.ne.s32.totalorder %s2134_s3, %s1414_s21  ;;  %p1421_p10 = scmp.lt.u32.totalorder %s1414_s21, %s2134_s3 }
  0x40   : > { %p1417_p2 = pnand %p1415_p1, %p1772_p13 }
  0x42   : > { %p1418_p6 = pneg %p1417_p2 }
  0x44   : > { %p1423_p3 = pnand %p1421_p10, %p1418_p6 }
  0x46   : > { %1426 = shalt.err (!%p1423_p3)
}
  0x47   : > { %s1427_s19 = scalar_lea.vmem %s1760_s22, 1024  ;;  %p1435_p12 = scmp.lt.s32.totalorder %s1760_s22, %s1760_s22 }
  0x48   : > { %p1428_p5 = scmp.ne.s32.totalorder %s1760_s22, %s1427_s19  ;;  %p1436_p0 = scmp.lt.s32.totalorder %s1427_s19, %s1427_s19 }
  0x4a   : > { %p1430_p7 = pnand %p1428_p5, %p1772_p13  ;;  %p1437_p1 = por %p1436_p0, %p1435_p12 }
  0x4c   : > { %p1431_p9 = pneg %p1430_p7 }
  0x4e   : > { %p1438_p2 = pnand %p1437_p1, %p1431_p9 }
  0x50   : > { %1441 = shalt.err (!%p1438_p2)
}
  0x51   : > { %1282 = dma.hbm_to_vmem [thread:$0]  (!%p1756_p11), %s2134_s3, 1024, %s1760_s22, [#allocation9], %s2118_s25, %s2118_s25, %s2120_s26  }
  0x52   : > { %s1442_s28 = scalar_lea.hbm %s2107_s5, 1024 }
  0x53   : > { %p1443_p6 = scmp.ne.s32.totalorder %s2107_s5, %s1442_s28  ;;  %p1449_p5 = scmp.lt.u32.totalorder %s1442_s28, %s2107_s5 }
  0x55   : > { %p1445_p10 = pnand %p1443_p6, %p1772_p13 }
  0x57   : > { %p1446_p3 = pneg %p1445_p10 }
  0x59   : > { %p1451_p7 = pnand %p1449_p5, %p1446_p3 }
  0x5b   : > { %1454 = shalt.err (!%p1451_p7)
}
  0x5c   : > { %s1455_s19 = scalar_lea.vmem %s302_s24, 1024  ;;  %p1463_p1 = scmp.lt.s32.totalorder %s302_s24, %s302_s24 }
  0x5d   : > { %p1456_p9 = scmp.ne.s32.totalorder %s302_s24, %s1455_s19  ;;  %p1464_p2 = scmp.lt.s32.totalorder %s1455_s19, %s1455_s19 }
  0x5f   : > { %p1458_p12 = pnand %p1456_p9, %p1772_p13  ;;  %p1465_p4 = por %p1464_p2, %p1463_p1 }
  0x61   : > { %p1459_p0 = pneg %p1458_p12 }
  0x63   : > { %p1466_p8 = pnand %p1465_p4, %p1459_p0 }
  0x65   : > { %1469 = shalt.err (!%p1466_p8)
}
  0x66   : > { %1285 = dma.hbm_to_vmem [thread:$0]  (!%p1756_p11), %s2107_s5, 1024, %s302_s24, [#allocation9], %s2118_s25, %s2118_s25, %s2120_s26  }
  0x67   : > { %s1647_s30 = smov [#allocation11]   ;;  %s1470_s29 = scalar_lea.hbm %s2109_s7, 1024 }
  0x68   : > { %s317_s16 = sshll.u32 %s1647_s30, 4  ;;  %p1471_p4 = scmp.ne.s32.totalorder %s2109_s7, %s1470_s29  ;;  %s318_s16 = int_to_ptr.vmem [resolvable:$true] %s317_s16 }
  0x69   : > { %p1477_p10 = scmp.lt.u32.totalorder %s1470_s29, %s2109_s7 }
  0x6a   : > { %p1473_p8 = pnand %p1471_p4, %p1772_p13 }
  0x6c   : > { %p1474_p6 = pneg %p1473_p8 }
  0x6e   : > { %p1479_p3 = pnand %p1477_p10, %p1474_p6 }
  0x70   : > { %1482 = shalt.err (!%p1479_p3)
}
  0x71   : > { %s1483_s24 = scalar_lea.vmem %s318_s16, 1024  ;;  %p1491_p12 = scmp.lt.s32.totalorder %s318_s16, %s318_s16 }
  0x72   : > { %p1484_p5 = scmp.ne.s32.totalorder %s318_s16, %s1483_s24  ;;  %p1492_p0 = scmp.lt.s32.totalorder %s1483_s24, %s1483_s24 }
  0x74   : > { %p1486_p7 = pnand %p1484_p5, %p1772_p13  ;;  %p1493_p1 = por %p1492_p0, %p1491_p12 }
  0x76   : > { %p1487_p9 = pneg %p1486_p7 }
  0x78   : > { %p1494_p2 = pnand %p1493_p1, %p1487_p9 }
  0x7a   : > { %1497 = shalt.err (!%p1494_p2)
}
  0x7b   : > { %1288 = dma.hbm_to_vmem [thread:$0]  (!%p1756_p11), %s2109_s7, 1024, %s318_s16, [#allocation12], %s2118_s25, %s2118_s25, %s2120_s26  }
  0x7c   : > { %s1866_s14 = sadd.s32 1, %s1640_s12   ;;  %s37_s20 = sadd.s32 1, %s1636_s11 }
  0x7d   : > { %s34_s30 = ssub.s32 %s1640_s12, %s1866_s14  ;;  %p44_p13 = scmp.ne.s32.totalorder %s1636_s11, %s1632_s10 }
  0x7e   : > { %p35_p4 = scmp.eq.s32.totalorder %s34_s30, 0  ;;  %p45_p8 = scmp.eq.s32.totalorder %s1640_s12, 0 }
  0x7f   : > { %p2135_p6 = scmp.eq.s32.totalorder %s1726_s13, 1  ;;  %p1304_p3 = scmp.lt.s32.totalorder %s1640_s12, 2 }
  0x80   : > { %s1882_s28 = scalar_select %p35_p4, %s1636_s11, %s37_s20  }
  0x81   : > { %p1876_p10 = por %p2135_p6, %p44_p13  ;;  %p46_p5 = por %p45_p8, %p44_p13 }
  0x82   : > { %s334_s29 = sand.u32 1, %s1636_s11   ;;  %s1135_s16 = sshll.u32 %s1640_s12, 7 }
  0x83   : > { %s1079_s18 = sshll.u32 %s334_s29, 3  ;;  %s2137_s0 = sld [smem:[#allocation22_spill]] }
  0x84   : > { %s338_s24 = scalar_lea.vmem [#allocation2], %s1079_s18  ;;  %p1893_p11 = pnand %p1304_p3, %p46_p5 }
  0x85   : > { %s345_s22 = sshll.u32 %s338_s24, 4  ;;  %s1900_s21 = scalar_lea.hbm %s2103_s1, %s1135_s16  ;;  %s1891_s22 = int_to_ptr.vmem [resolvable:$true] %s345_s22 }
  0x86   : > { %s359_s23 = scalar_lea.vmem [#allocation5], %s1079_s18  ;;  %s1904_s26 = scalar_lea.sflag [#allocation3], %s334_s29 }
  0x87   : > { %s1902_s25 = sshll.u32 %s359_s23, 4  ;;  %p1500_p9 = pneg %p1893_p11  ;;  %s1936_s25 = int_to_ptr.vmem [resolvable:$true] %s1902_s25 }
  0x89   : > { %s1889_s19 = scalar_lea.hbm %s2137_s0, %s1135_s16  ;;  %s1503_s20 = scalar_lea.hbm %s2137_s0, 256 }
  0x8a   : > { %s1498_s24 = scalar_lea.hbm %s1889_s19, 128  ;;  %p1504_p1 = scmp.lt.u32.totalorder %s1889_s19, %s2137_s0 }
  0x8b   : > { %p1499_p7 = scmp.ne.s32.totalorder %s1889_s19, %s1498_s24  ;;  %p1505_p2 = scmp.lt.u32.totalorder %s1503_s20, %s1498_s24 }
  0x8c   : > { %p1507_p4 = scmp.lt.u32.totalorder %s1498_s24, %s1889_s19 }
  0x8d   : > { %p1501_p12 = pnand %p1500_p9, %p1499_p7  ;;  %p1506_p13 = por %p1505_p2, %p1504_p1 }
  0x8f   : > { %p1502_p0 = pneg %p1501_p12  ;;  %p1508_p8 = por %p1507_p4, %p1506_p13 }
  0x91   : > { %p1509_p6 = pnand %p1508_p8, %p1502_p0 }
  0x93   : > { %1512 = shalt.err (!%p1509_p6)
}
  0x94   : > { %s1513_s29 = scalar_lea.vmem %s1891_s22, 128  ;;  %s1648_s2 = smov [#allocation2]  }
  0x95   : > { %p1514_p3 = scmp.ne.s32.totalorder %s1891_s22, %s1513_s29  ;;  %s1518_s3 = sshll.u32 %s1648_s2, 4  ;;  %s1519_s3 = int_to_ptr.vmem [resolvable:$false] %s1518_s3 }
  0x96   : > { %s1520_s18 = scalar_lea.vmem %s1519_s3, 256  ;;  %p1521_p12 = scmp.lt.s32.totalorder %s1891_s22, %s1519_s3 }
  0x97   : > { %p1516_p5 = pnand %p1514_p3, %p1500_p9  ;;  %p1522_p1 = scmp.lt.s32.totalorder %s1520_s18, %s1513_s29 }
  0x99   : > { %p1517_p7 = pneg %p1516_p5  ;;  %p1523_p2 = por %p1522_p1, %p1521_p12 }
  0x9b   : > { %p1524_p13 = pnand %p1523_p2, %p1517_p7 }
  0x9d   : > { %1527 = shalt.err (!%p1524_p13)
}
  0x9e   : > { %s2139_s23 = smov 4   ;;  %s2140_s24 = smov 64  }
  0x9f   : > { %1292 = dma.hbm_to_vmem [thread:$0]  (!%p1893_p11), %s1889_s19, 128, %s1891_s22, %s1904_s26, %s2140_s24, %s2140_s24, %s2139_s23  }
  0xa0   : > { %s355_s20 = sand.u32 1, %s1640_s12   ;;  %s1528_s16 = scalar_lea.hbm %s1900_s21, 128 }
  0xa1   : > { %s1939_s30 = scalar_lea.sflag [#allocation6], %s355_s20  ;;  %p1529_p0 = scmp.ne.s32.totalorder %s1900_s21, %s1528_s16 }
  0xa2   : > { %s1533_s3 = scalar_lea.hbm %s2103_s1, 256  ;;  %p1534_p6 = scmp.lt.u32.totalorder %s1900_s21, %s2103_s1 }
  0xa3   : > { %p1531_p4 = pnand %p1529_p0, %p1500_p9  ;;  %p1535_p3 = scmp.lt.u32.totalorder %s1533_s3, %s1528_s16 }
  0xa4   : > { %p1537_p7 = scmp.lt.u32.totalorder %s1528_s16, %s1900_s21 }
  0xa5   : > { %p1532_p8 = pneg %p1531_p4  ;;  %p1536_p5 = por %p1535_p3, %p1534_p6 }
  0xa7   : > { %p1538_p12 = por %p1537_p7, %p1536_p5 }
  0xa9   : > { %p1539_p1 = pnand %p1538_p12, %p1532_p8 }
  0xab   : > { %1542 = shalt.err (!%p1539_p1)
}
  0xac   : > { %s1543_s26 = scalar_lea.vmem %s1936_s25, 128  ;;  %s1649_s19 = smov [#allocation5]  }
  0xad   : > { %p1544_p2 = scmp.ne.s32.totalorder %s1936_s25, %s1543_s26  ;;  %s1548_s22 = sshll.u32 %s1649_s19, 4  ;;  %s1549_s22 = int_to_ptr.vmem [resolvable:$false] %s1548_s22 }
  0xae   : > { %s1550_s0 = scalar_lea.vmem %s1549_s22, 256  ;;  %p1551_p4 = scmp.lt.s32.totalorder %s1936_s25, %s1549_s22 }
  0xaf   : > { %p1546_p13 = pnand %p1544_p2, %p1500_p9  ;;  %p1552_p6 = scmp.lt.s32.totalorder %s1550_s0, %s1543_s26 }
  0xb1   : > { %p1547_p0 = pneg %p1546_p13  ;;  %p1553_p3 = por %p1552_p6, %p1551_p4 }
  0xb3   : > { %p1554_p5 = pnand %p1553_p3, %p1547_p0 }
  0xb5   : > { %1557 = shalt.err (!%p1554_p5)
}
  0xb6   : > { %1295 = dma.hbm_to_vmem [thread:$0]  (!%p1893_p11), %s1900_s21, 128, %s1936_s25, %s1939_s30, %s2140_s24, %s2140_s24, %s2139_s23  }
  0xb7   : > { %p2141_p9 = scmp.ne.s32.totalorder %s2130_s17, 0 }
  0xb8   : > { %s1971_s20 = sand.u32 (!%p2141_p9), 1, %s1632_s10   ;;  %p2142_p8 = scmp.ne.s32.totalorder (!%p2141_p9), %s2127_s15, 0 }
  0xb9   : > { %378 = sbr.rel (%p2141_p9) target bundleno = 917 (0x395), region = 56  ;;  %s1086_s16 = sshll.u32 (!%p2141_p9), %s1971_s20, 3 }
  0xba   : > { %s381_s29 = scalar_lea.sflag (!%p2141_p9), [#allocation3], %s1971_s20  ;;  %s1975_s2 = scalar_lea.vmem (!%p2141_p9), [#allocation2], %s1086_s16 }
  0xc0   : > { %1603 = dma.done.wait (%p2142_p8), %s381_s29, 128  }
  0xc1   : > { %1605 = vsyncadd (%p2142_p8), %s381_s29, 4294967168  ;;  %s389_s25 = sand.u32 1, %s1726_s13   ;;  %s1982_s9 = scalar_lea.vmem [#allocation5], %s1086_s16 }
  0xc2   : > { %s390_s17 = scalar_lea.sflag [#allocation6], %s389_s25 }
  0xc3   : > { %1607 = dma.done.wait (%p2142_p8), %s390_s17, 128  }
  0xc4   : > { %1609 = vsyncadd (%p2142_p8), %s390_s17, 4294967168  ;;  %p2143_p11 = scmp.eq.s32.totalorder %s1726_s13, 0 }
  0xc6   : > { %1611 = dma.done.wait (%p2143_p11), [#allocation6], 1024   ;;  %p2144_p7 = pmov %p2143_p11 }
  0xc8   : > { %1613 = vsyncadd (%p2144_p7), [#allocation6], 4294966272  ;;  %p2145_p12 = pmov %p2144_p7 }
  0xc9   : > { %p2146_p1 = pmov %p2144_p7 }
  0xca   : > { %1615 = dma.done.wait (%p2145_p12), [#allocation9], 2048  }
  0xcb   : > { %1617 = vsyncadd (%p2146_p1), [#allocation9], 4294965248  ;;  %p2147_p2 = pmov %p2146_p1 }
  0xcc   : > { %p2148_p13 = pmov %p2146_p1 }
  0xcd   : > { %1619 = dma.done.wait (%p2147_p2), [#allocation12], 1024  }
  0xce   : > { %1621 = vsyncadd (%p2148_p13), [#allocation12], 4294966272  ;;  %v1650_v0 = vmov 0.0   ;;  %vm1651_vm0 = vmmov 0   ;;  %v1352_v1 = vld [vmem:[#allocation8] sm:$0xff]   ;;  %v1354_v3 = vld [vmem:[#allocation8 + $0x8] sm:$0xff]  }
  0xcf   : > { %1174 = vmatprep.subr.bf16.mxu0 %v1650_v0  ;;  %1194 = vmatprep.subr.bf16.mxu1 %v1650_v0  ;;  %v1353_v2 = vld [vmem:[#allocation7] sm:$0xff]   ;;  %v1355_v4 = vld [vmem:[#allocation7 + $0x8] sm:$0xff]   ;;  %v1356_v5 = vld [vmem:[#allocation8 + $0x10] sm:$0xff]   ;;  %s1092_s30 = sshll.u32 %s1971_s20, 4  ;;  %s1137_s22 = sshll.u32 %s1726_s13, 8 }
  0xd0   : > { %1190 = vmatprep.mubr.msk.bf16.mxu0 %vm1651_vm0, %v1650_v0  ;;  %1210 = vmatprep.mubr.msk.bf16.mxu1 %vm1651_vm0, %v1650_v0  ;;  %v1357_v6 = vld [vmem:[#allocation7 + $0x10] sm:$0xff]   ;;  %v1358_v7 = vld [vmem:[#allocation8 + $0x18] sm:$0xff]   ;;  %v1360_v9 = vld [vmem:[#allocation8 + $0x20] sm:$0xff]   ;;  %s448_s26 = scalar_lea.vmem [#allocation13], %s1092_s30  ;;  %s2149_s29 = sld [smem:[#allocation25_spill]] }
  0xd1   : > { %1175 = vmatpush3.bf16.msra.mxu0 %v1352_v1  ;;  %1195 = vmatpush3.bf16.msra.mxu1 %v1353_v2  ;;  %v1359_v8 = vld [vmem:[#allocation7 + $0x18] sm:$0xff]   ;;  %v1361_v10 = vld [vmem:[#allocation7 + $0x20] sm:$0xff]   ;;  %v1362_v11 = vld [vmem:[#allocation8 + $0x28] sm:$0xff]   ;;  %s938_s19 = sshll.u32 %s448_s26, 4  ;;  %s925_s25 = scalar_lea.sflag [#allocation4], %s1971_s20  ;;  %s2053_s19 = int_to_ptr.vmem [resolvable:$true] %s938_s19 }
  0xd2   : > { %1176 = vmatprep.subr.bf16.mxu0 %v1650_v0  ;;  %1196 = vmatprep.subr.bf16.mxu1 %v1650_v0  ;;  %v1363_v12 = vld [vmem:[#allocation7 + $0x28] sm:$0xff]   ;;  %v1364_v13 = vld [vmem:[#allocation8 + $0x30] sm:$0xff]   ;;  %v1366_v15 = vld [vmem:[#allocation8 + $0x38] sm:$0xff]   ;;  %s1558_s17 = scalar_lea.vmem %s2053_s19, 256  ;;  %s1652_s13 = smov [#allocation13]  }
  0xd3   : > { %v1365_v14 = vld [vmem:[#allocation7 + $0x30] sm:$0xff]   ;;  %v1367_v16 = vld [vmem:[#allocation7 + $0x38] sm:$0xff]   ;;  %v1369_v18 = vld [vmem:[%s1975_s2] sm:$0xff]   ;;  %p1559_p0 = scmp.ne.s32.totalorder %s2053_s19, %s1558_s17 }
  0xd4   : > { %v1368_v17 = vld [vmem:[%s1982_s9] sm:$0xff]   ;;  %v1370_v19 = vld [vmem:[#allocation10] sm:$0xff]   ;;  %v1371_v20 = vld [vmem:[#allocation10 + $0x8] sm:$0xff]   ;;  %s1562_s9 = sshll.u32 %s1652_s13, 4  ;;  %s1563_s9 = int_to_ptr.vmem [resolvable:$false] %s1562_s9 }
  0xd5   : > { %1177 = vmatpush3.bf16.msra.mxu0 %v1354_v3  ;;  %1197 = vmatpush3.bf16.msra.mxu1 %v1355_v4  ;;  %v1372_v21 = vld [vmem:[#allocation10 + $0x10] sm:$0xff]   ;;  %v1373_v22 = vld [vmem:[#allocation10 + $0x18] sm:$0xff]   ;;  %v1374_v23 = vld [vmem:[#allocation10 + $0x20] sm:$0xff]   ;;  %p1560_p4 = pnand %p1559_p0, %p1876_p10  ;;  %s1564_s15 = scalar_lea.vmem %s1563_s9, 512 }
  0xd6   : > { %1178 = vmatprep.subr.bf16.mxu0 %v1650_v0  ;;  %1198 = vmatprep.subr.bf16.mxu1 %v1650_v0  ;;  %v1375_v24 = vld [vmem:[#allocation10 + $0x28] sm:$0xff]   ;;  %v1376_v25 = vld [vmem:[#allocation10 + $0x30] sm:$0xff]   ;;  %v1377_v26 = vld [vmem:[#allocation10 + $0x38] sm:$0xff]   ;;  %s2058_s2 = scalar_lea.hbm %s2149_s29, %s1137_s22  ;;  %p1565_p3 = scmp.lt.s32.totalorder %s2053_s19, %s1563_s9 }
  0xd7   : > { %v1378_v27 = vld [vmem:[#allocation11] sm:$0xff]   ;;  %v1379_v28 = vld [vmem:[#allocation11 + $0x8] sm:$0xff]   ;;  %v1380_v29 = vld [vmem:[#allocation11 + $0x10] sm:$0xff]   ;;  %p1561_p6 = pneg %p1560_p4  ;;  %p1566_p5 = scmp.lt.s32.totalorder %s1564_s15, %s1558_s17 }
  0xd8   : > { %v1381_v30 = vld [vmem:[#allocation11 + $0x18] sm:$0xff]   ;;  %v1382_v31 = vld [vmem:[#allocation11 + $0x20] sm:$0xff]   ;;  %v1383_v32 = vld [vmem:[#allocation11 + $0x28] sm:$0xff]  }
  0xd9   : > { %1179 = vmatpush3.bf16.msra.mxu0 %v1356_v5  ;;  %1199 = vmatpush3.bf16.msra.mxu1 %v1357_v6  ;;  %v1111_v35 = vld [vmem:[%s2106_s4] ss:$0 sm:$0xff]  ;;  %v1384_v49 = vld [vmem:[#allocation11 + $0x30] sm:$0xff]   ;;  %v1385_v50 = vld [vmem:[#allocation11 + $0x38] sm:$0xff]   ;;  %p1567_p9 = por %p1566_p5, %p1565_p3 }
  0xda   : > { %1180 = vmatprep.subr.bf16.mxu0 %v1650_v0  ;;  %1200 = vmatprep.subr.bf16.mxu1 %v1650_v0  ;;  %v1112_v51 = vld [vmem:[%s2108_s6] ss:$0 sm:$0xff] }
  0xdb   : > { %v1121_v61 = vld [vmem:[%s2110_s8] ss:$0 sm:$0xff]  ;;  %p1568_p8 = pnand %p1567_p9, %p1561_p6 }
  0xdd   : > { %1181 = vmatpush3.bf16.msra.mxu0 %v1358_v7  ;;  %1201 = vmatpush3.bf16.msra.mxu1 %v1359_v8 }
  0xde   : > { %1182 = vmatprep.subr.bf16.mxu0 %v1650_v0  ;;  %1202 = vmatprep.subr.bf16.mxu1 %v1650_v0 }
  0xe1   : > { %1183 = vmatpush3.bf16.msra.mxu0 %v1360_v9  ;;  %1203 = vmatpush3.bf16.msra.mxu1 %v1361_v10 }
  0xe2   : > { %1184 = vmatprep.subr.bf16.mxu0 %v1650_v0  ;;  %1204 = vmatprep.subr.bf16.mxu1 %v1650_v0 }
  0xe5   : > { %1185 = vmatpush3.bf16.msra.mxu0 %v1362_v11  ;;  %1205 = vmatpush3.bf16.msra.mxu1 %v1363_v12 }
  0xe6   : > { %1186 = vmatprep.subr.bf16.mxu0 %v1650_v0  ;;  %1206 = vmatprep.subr.bf16.mxu1 %v1650_v0 }
  0xe9   : > { %1187 = vmatpush3.bf16.msra.mxu0 %v1364_v13  ;;  %1207 = vmatpush3.bf16.msra.mxu1 %v1365_v14 }
  0xea   : > { %1188 = vmatprep.subr.bf16.mxu0 %v1650_v0  ;;  %1208 = vmatprep.subr.bf16.mxu1 %v1650_v0 }
  0xed   : > { %1189 = vmatpush3.bf16.msra.mxu0 %v1366_v15  ;;  %1209 = vmatpush3.bf16.msra.mxu1 %v1367_v16 }
  0xee   : > { %1214 = vmatprep.subr.bf16.mxu0 %v1650_v0  ;;  %1234 = vmatprep.subr.bf16.mxu1 %v1650_v0 }
  0xf0   : > { %1191 = vmatmul.mubr.bf16.vlgmr.msra.gmra.mrb[0].mxu0 %v1368_v17  ;;  %1211 = vmatmul.mubr.bf16.vlgmr.msra.gmra.mrb[0].mxu1 %v1369_v18 }
  0xf1   : > { %1215 = vmatpush3.bf16.msra.mxu0 %v1370_v19  ;;  %1230 = vmatprep.mubr.msk.bf16.mxu0 %vm1651_vm0, %v1650_v0 }
  0xf2   : > { %1216 = vmatprep.subr.bf16.mxu0 %v1650_v0  ;;  %1250 = vmatprep.mubr.msk.bf16.mxu1 %vm1651_vm0, %v1650_v0 }
  0xf3   : > { %1235 = vmatpush3.bf16.msra.mxu1 %v1378_v27 }
  0xf4   : > { %1236 = vmatprep.subr.bf16.mxu1 %v1650_v0 }
  0xf5   : > { %1217 = vmatpush3.bf16.msra.mxu0 %v1371_v20 }
  0xf6   : > { %1218 = vmatprep.subr.bf16.mxu0 %v1650_v0 }
  0xf7   : > { %1237 = vmatpush3.bf16.msra.mxu1 %v1379_v28 }
  0xf8   : > { %1238 = vmatprep.subr.bf16.mxu1 %v1650_v0 }
  0xf9   : > { %1219 = vmatpush3.bf16.msra.mxu0 %v1372_v21 }
  0xfa   : > { %1220 = vmatprep.subr.bf16.mxu0 %v1650_v0 }
  0xfb   : > { %1239 = vmatpush3.bf16.msra.mxu1 %v1380_v29 }
  0xfc   : > { %1240 = vmatprep.subr.bf16.mxu1 %v1650_v0 }
  0xfd   : > { %1221 = vmatpush3.bf16.msra.mxu0 %v1373_v22 }
  0xfe   : > { %1222 = vmatprep.subr.bf16.mxu0 %v1650_v0 }
  0xff   : > { %1241 = vmatpush3.bf16.msra.mxu1 %v1381_v30 }
 0x100   : > { %1242 = vmatprep.subr.bf16.mxu1 %v1650_v0 }
 0x101   : > { %1223 = vmatpush3.bf16.msra.mxu0 %v1374_v23 }
 0x102   : > { %1224 = vmatprep.subr.bf16.mxu0 %v1650_v0 }
 0x103   : > { %1243 = vmatpush3.bf16.msra.mxu1 %v1382_v31 }
 0x104   : > { %1244 = vmatprep.subr.bf16.mxu1 %v1650_v0 }
 0x105   : > { %1225 = vmatpush3.bf16.msra.mxu0 %v1375_v24 }
 0x106   : > { %1226 = vmatprep.subr.bf16.mxu0 %v1650_v0 }
 0x107   : > { %1245 = vmatpush3.bf16.msra.mxu1 %v1383_v32 }
 0x108   : > { %1246 = vmatprep.subr.bf16.mxu1 %v1650_v0 }
 0x109   : > { %1227 = vmatpush3.bf16.msra.mxu0 %v1376_v25 }
 0x10a   : > { %1228 = vmatprep.subr.bf16.mxu0 %v1650_v0 }
 0x10b   : > { %1247 = vmatpush3.bf16.msra.mxu1 %v1384_v49 }
 0x10c   : > { %1248 = vmatprep.subr.bf16.mxu1 %v1650_v0 }
 0x10d   : > { %1229 = vmatpush3.bf16.msra.mxu0 %v1377_v26 }
 0x10f   : > { %1249 = vmatpush3.bf16.msra.mxu1 %v1385_v50 }
 0x1c3   : > { %v577_v33 = vpop.f32.mrb[0].mxu0  ;;  %v672_v34 = vpop.f32.mrb[0].mxu1 }
 0x1c4   : > { %v1192_v36 = vpop.f32.mrb[1].mxu0  ;;  %v673_v37 = vadd.f32 %v672_v34, %v577_v33  ;;  %v1212_v38 = vpop.f32.mrb[1].mxu1 }
 0x1c5   : > { %v580_v39 = vpop.f32.mrb[2].mxu0  ;;  %v675_v40 = vpop.f32.mrb[2].mxu1 }
 0x1c6   : > { %v1193_v41 = vpop.f32.mrb[3].mxu0  ;;  %v686_v42 = vadd.f32 %v1111_v35, %v673_v37  ;;  %v676_v43 = vadd.f32 %v675_v40, %v580_v39  ;;  %v1213_v44 = vpop.f32.mrb[3].mxu1 }
 0x1c8   : > { %v687_v45 = vadd.f32 %v1111_v35, %v676_v43  ;;  %v688_v46 = vmax.f32 %v686_v42, 0.0 }
 0x1ca   : > { %v689_v47 = vmax.f32 %v687_v45, 0.0 }
 0x1cc   : > { %v707_v48 = vpack.c.bf16 %v689_v47, %v688_v46 }
 0x1ce   : > { %1231 = vmatmul.mubr.bf16.vlgmr.msra.gmra.mrb[4].mxu0 %v707_v48 }
 0x2a1   : > { %v796_v52 = vpop.f32.mrb[4].mxu0 }
 0x2a2   : > { %v797_v53 = vadd.f32 %v1112_v51, %v796_v52  ;;  %v1232_v54 = vpop.f32.mrb[5].mxu0 }
 0x2a3   : > { %v799_v55 = vpop.f32.mrb[6].mxu0 }
 0x2a4   : > { %v800_v56 = vadd.f32 %v1112_v51, %v799_v55  ;;  %v1233_v57 = vpop.f32.mrb[7].mxu0  ;;  %v803_v58 = vmax.f32 %v797_v53, 0.0 }
 0x2a6   : > { %v804_v59 = vmax.f32 %v800_v56, 0.0 }
 0x2a8   : > { %v805_v60 = vpack.c.bf16 %v804_v59, %v803_v58 }
 0x2aa   : > { %1251 = vmatmul.mubr.bf16.vlgmr.msra.gmra.mrb[4].mxu1 %v805_v60 }
 0x37d   : > { %v911_v62 = vpop.f32.mrb[4].mxu1 }
 0x37e   : > { %v912_v63 = vadd.f32 %v1121_v61, %v911_v62  ;;  %v1252_v0 = vpop.f32.mrb[5].mxu1 }
 0x37f   : > { %v914_v1 = vpop.f32.mrb[6].mxu1 }
 0x380   : > { %v918_v2 = vmax.f32 %v912_v63, 0.05  ;;  %v915_v3 = vadd.f32 %v1121_v61, %v914_v1  ;;  %v1253_v4 = vpop.f32.mrb[7].mxu1 }
 0x382   : > { %v920_v5 = vmin.f32 %v918_v2, 1e+09  ;;  %v919_v6 = vmax.f32 %v915_v3, 0.05 }
 0x384   : > { %922 = vst [vmem:[%s448_s26] sm:$0xff] %v920_v5  ;;  %v921_v7 = vmin.f32 %v919_v6, 1e+09 }
 0x386   : > { %923 = vst [vmem:[%s448_s26 + $0x8] sm:$0xff] %v921_v7 }
 0x387   : > { %1571 = shalt.err (!%p1568_p8)
}
 0x388   : > { %s1572_s21 = scalar_lea.hbm %s2058_s2, 256  ;;  %s1576_s30 = scalar_lea.hbm %s2149_s29, 512 }
 0x389   : > { %p1573_p11 = scmp.ne.s32.totalorder %s2058_s2, %s1572_s21  ;;  %p1577_p1 = scmp.lt.u32.totalorder %s2058_s2, %s2149_s29 }
 0x38a   : > { %p1578_p2 = scmp.lt.u32.totalorder %s1576_s30, %s1572_s21  ;;  %p1580_p0 = scmp.lt.u32.totalorder %s1572_s21, %s2058_s2 }
 0x38b   : > { %p1574_p7 = pnand %p1573_p11, %p1876_p10 }
 0x38c   : > { %p1579_p13 = por %p1578_p2, %p1577_p1 }
 0x38d   : > { %p1575_p12 = pneg %p1574_p7 }
 0x38e   : > { %p1581_p4 = por %p1580_p0, %p1579_p13 }
 0x390   : > { %p1582_p6 = pnand %p1581_p4, %p1575_p12 }
 0x392   : > { %1585 = shalt.err (!%p1582_p6)
}
 0x393   : > { %s1653_s26 = smov 128   ;;  %s1654_s22 = smov 8  }
 0x394   : > { %1274 = dma.vmem_to_hbm [thread:$0]  (%p1876_p10), %s2053_s19, 256, %s2058_s2, %s925_s25, %s1653_s26, %s1653_s26, %s1654_s22  }
 0x395 PF: > { %s2150_s0 = sld [smem:[#allocation20_spill]]  ;;  %s2151_s16 = sld [smem:[#allocation21_spill]] }
 0x396   : > { %p2153_p5 = scmp.ge.s32.totalorder %s1640_s12, 2 }
 0x39b   : > { %s953_s17 = sand.u32 1, %s2150_s0   ;;  %p2152_p3 = scmp.ne.s32.totalorder %s2151_s16, 0 }
 0x39c   : > { %s954_s13 = scalar_lea.sflag [#allocation4], %s953_s17 }
 0x39d   : > { %p1297_p9 = pnand %p2153_p5, %p2152_p3 }
 0x39f   : > { %1623 = dma.done.wait (!%p1297_p9), %s954_s13, 256  }
 0x3a0   : > { %1625 = vsyncadd (!%p1297_p9), %s954_s13, 4294967040  ;;  %p27_p8 = scmp.ge.s32.totalorder %s1866_s14, 4   ;;  %s2154_s30 = smov %s1632_s10 }
 0x3a1   : > { %s2155_s10 = smov %s1636_s11  ;;  %s2156_s11 = smov %s1882_s28 }
 0x3a2   : > { %s2157_s12 = smov %s1866_s14  ;;  %29 = sbr.rel (!%p27_p8) target bundleno = 14 (0xe), region = 130 }
 0x3a9   :  { %959 = vsyncpa [#allocation3], 1 }
 0x3aa   :  { %961 = vsyncpa [#allocation3 + $0x1], 1 }
 0x3ab   :  { %962 = vsyncpa [#allocation6], 1 }
 0x3ac   :  { %964 = vsyncpa [#allocation6 + $0x1], 1 }
 0x3ad   :  { %965 = vsyncpa [#allocation9], 1 }
 0x3ae   :  { %966 = vsyncpa [#allocation12], 1 }
 0x3af   :  { %967 = vsyncpa [#allocation4], 1 }
 0x3b0   :  { %969 = vsyncpa [#allocation4 + $0x1], 1 }

// kernel: tpu_custom_call.1
= control target key start
LH: loop header
LB: loop body
LE: loop exit
PB: predicated region body
PF: predicated region fallthrough
CT: control target
= control target key end

     0   :  { %s2102_s0 = inlined_call_operand.hbm [shape: bf16[32,128], index: 0, kind: input, shape index: {}]   ;;  %s2103_s1 = inlined_call_operand.hbm [shape: bf16[32,128], index: 1, kind: input, shape index: {}]   ;;  %s2104_s2 = inlined_call_operand.hbm [shape: bf16[128,128], index: 2, kind: input, shape index: {}]   ;;  %s2105_s3 = inlined_call_operand.hbm [shape: bf16[128,128], index: 3, kind: input, shape index: {}]   ;;  %s2106_s4 = inlined_call_operand.vmem [shape: f32[1,128], index: 4, kind: input, shape index: {}]   ;;  %s2107_s5 = inlined_call_operand.hbm [shape: bf16[128,128], index: 5, kind: input, shape index: {}]   ;;  %s2108_s6 = inlined_call_operand.vmem [shape: f32[1,128], index: 6, kind: input, shape index: {}]   ;;  %s2109_s7 = inlined_call_operand.hbm [shape: bf16[128,128], index: 7, kind: input, shape index: {}]   ;;  %s2110_s8 = inlined_call_operand.vmem [shape: f32[1,128], index: 8, kind: input, shape index: {}]   ;;  %s2111_s9 = inlined_call_operand.hbm [shape: f32[32,128], index: 9, kind: output, shape index: {}]  }
   0x1   :  { %2122 = sst [smem:[#allocation22_spill]] %s2102_s0 }
   0x2   :  { %2123 = sst [smem:[#allocation23_spill]] %s2104_s2 }
   0x3   :  { %2124 = sst [smem:[#allocation24_spill]] %s2105_s3 }
   0x4   :  { %2125 = sst [smem:[#allocation25_spill]] %s2111_s9 }
   0x5   :  { %14 = vsyncpa [#allocation3], 0 }
   0x6   :  { %16 = vsyncpa [#allocation3 + $0x1], 0 }
   0x7   :  { %17 = vsyncpa [#allocation6], 0 }
   0x8   :  { %19 = vsyncpa [#allocation6 + $0x1], 0 }
   0x9   :  { %20 = vsyncpa [#allocation9], 0 }
   0xa   :  { %21 = vsyncpa [#allocation12], 0 }
   0xb   :  { %22 = vsyncpa [#allocation4], 0 }
   0xc   :  { %24 = vsyncpa [#allocation4 + $0x1], 0  ;;  %s1705_s30 = smov 0   ;;  %s1707_s10 = smov 0  }
   0xd   :  { %s1709_s11 = smov 0   ;;  %s1711_s12 = smov 0  }
   0xe LB: > { %2126 = sst [smem:[#allocation20_spill]] %s1628_s30  ;;  %s1726_s13 = sadd.s32 4294967295, %s1640_s12   ;;  %s1640_s12 = sphi %s1711_s12, %s2157_s12   ;;  %s1636_s11 = sphi %s1709_s11, %s2156_s11   ;;  %s1632_s10 = sphi %s1707_s10, %s2155_s10   ;;  %s1628_s30 = sphi %s1705_s30, %s2154_s30  }
   0xf   : > { %s1072_s14 = sadd.s32 4294967294, %s1640_s12   ;;  %p50_p0 = scmp.ne.s32.totalorder %s1632_s10, %s1628_s30 }
  0x10   : > { %p2112_p1 = scmp.eq.s32.totalorder %s1726_s13, 0  ;;  %p253_p3 = scmp.eq.s32.totalorder %s1072_s14, 1 }
  0x11   : > { %p1073_p5 = scmp.ge.s32.totalorder %s1640_s12, 1  ;;  %p260_p7 = scmp.lt.s32.totalorder %s1640_s12, 3 }
  0x12   : > { %p1735_p4 = por %p2112_p1, %p50_p0  ;;  %p1740_p6 = por %p253_p3, %p50_p0 }
  0x13   : > { %p1745_p8 = pnand %p1073_p5, %p260_p7  ;;  %s1642_s18 = smov [#allocation7]  }
  0x14   : > { %s2127_s15 = scalar_select %p1735_p4, 1, 0 }
  0x15   : > { %s2128_s16 = scalar_select %p1740_p6, 1, 0 }
  0x16   : > { %s2130_s17 = scalar_select %p1745_p8, 1, 0 }
  0x17   : > { %2129 = sst [smem:[#allocation21_spill]] %s2128_s16  ;;  %s272_s19 = sshll.u32 %s1642_s18, 4  ;;  %s1749_s19 = int_to_ptr.vmem [resolvable:$true] %s272_s19 }
  0x18   : > { %p1276_p9 = pneg %p1745_p8  ;;  %s1643_s21 = smov [#allocation8]  }
  0x19   : > { %s285_s22 = sshll.u32 %s1643_s21, 4  ;;  %s1644_s23 = smov [#allocation10]   ;;  %s1760_s22 = int_to_ptr.vmem [resolvable:$true] %s285_s22 }
  0x1a   : > { %p1756_p11 = pnand %p1276_p9, %p2112_p1  ;;  %s1762_s24 = sshll.u32 %s1644_s23, 4  ;;  %s302_s24 = int_to_ptr.vmem [resolvable:$true] %s1762_s24 }
  0x1b   : > { %s2132_s2 = sld [smem:[#allocation23_spill]] }
  0x1c   : > { %p1772_p13 = pneg %p1756_p11 }
  0x21   : > { %s1386_s27 = scalar_lea.hbm %s2132_s2, 1024 }
  0x22   : > { %p1387_p12 = scmp.ne.s32.totalorder %s2132_s2, %s1386_s27  ;;  %p1393_p5 = scmp.lt.u32.totalorder %s1386_s27, %s2132_s2 }
  0x24   : > { %p1389_p0 = pnand %p1772_p13, %p1387_p12 }
  0x26   : > { %p1390_p3 = pneg %p1389_p0 }
  0x28   : > { %p1395_p7 = pnand %p1393_p5, %p1390_p3 }
  0x2a   : > { %1398 = shalt.err (!%p1395_p7)
}
  0x2b   : > { %s1399_s23 = scalar_lea.vmem %s1749_s19, 1024  ;;  %p1407_p2 = scmp.lt.s32.totalorder %s1749_s19, %s1749_s19 }
  0x2c   : > { %p1400_p9 = scmp.ne.s32.totalorder %s1749_s19, %s1399_s23  ;;  %p1408_p6 = scmp.lt.s32.totalorder %s1399_s23, %s1399_s23 }
  0x2e   : > { %p1402_p10 = pnand %p1400_p9, %p1772_p13  ;;  %p1409_p12 = por %p1408_p6, %p1407_p2 }
  0x30   : > { %p1403_p1 = pneg %p1402_p10 }
  0x32   : > { %p1410_p0 = pnand %p1409_p12, %p1403_p1 }
  0x34   : > { %1413 = shalt.err (!%p1410_p0)
}
  0x35   : > { %s2118_s25 = smov 64   ;;  %s2120_s26 = smov 4  }
  0x36   : > { %1279 = dma.hbm_to_vmem [thread:$0]  (!%p1756_p11), %s2132_s2, 1024, %s1749_s19, [#allocation6], %s2118_s25, %s2118_s25, %s2120_s26  }
  0x37   : > { %s2134_s3 = sld [smem:[#allocation24_spill]] }
  0x3d   : > { %s1414_s21 = scalar_lea.hbm %s2134_s3, 1024 }
  0x3e   : > { %p1415_p1 = scmp.ne.s32.totalorder %s2134_s3, %s1414_s21  ;;  %p1421_p10 = scmp.lt.u32.totalorder %s1414_s21, %s2134_s3 }
  0x40   : > { %p1417_p2 = pnand %p1415_p1, %p1772_p13 }
  0x42   : > { %p1418_p6 = pneg %p1417_p2 }
  0x44   : > { %p1423_p3 = pnand %p1421_p10, %p1418_p6 }
  0x46   : > { %1426 = shalt.err (!%p1423_p3)
}
  0x47   : > { %s1427_s19 = scalar_lea.vmem %s1760_s22, 1024  ;;  %p1435_p12 = scmp.lt.s32.totalorder %s1760_s22, %s1760_s22 }
  0x48   : > { %p1428_p5 = scmp.ne.s32.totalorder %s1760_s22, %s1427_s19  ;;  %p1436_p0 = scmp.lt.s32.totalorder %s1427_s19, %s1427_s19 }
  0x4a   : > { %p1430_p7 = pnand %p1428_p5, %p1772_p13  ;;  %p1437_p1 = por %p1436_p0, %p1435_p12 }
  0x4c   : > { %p1431_p9 = pneg %p1430_p7 }
  0x4e   : > { %p1438_p2 = pnand %p1437_p1, %p1431_p9 }
  0x50   : > { %1441 = shalt.err (!%p1438_p2)
}
  0x51   : > { %1282 = dma.hbm_to_vmem [thread:$0]  (!%p1756_p11), %s2134_s3, 1024, %s1760_s22, [#allocation9], %s2118_s25, %s2118_s25, %s2120_s26  }
  0x52   : > { %s1442_s28 = scalar_lea.hbm %s2107_s5, 1024 }
  0x53   : > { %p1443_p6 = scmp.ne.s32.totalorder %s2107_s5, %s1442_s28  ;;  %p1449_p5 = scmp.lt.u32.totalorder %s1442_s28, %s2107_s5 }
  0x55   : > { %p1445_p10 = pnand %p1443_p6, %p1772_p13 }
  0x57   : > { %p1446_p3 = pneg %p1445_p10 }
  0x59   : > { %p1451_p7 = pnand %p1449_p5, %p1446_p3 }
  0x5b   : > { %1454 = shalt.err (!%p1451_p7)
}
  0x5c   : > { %s1455_s19 = scalar_lea.vmem %s302_s24, 1024  ;;  %p1463_p1 = scmp.lt.s32.totalorder %s302_s24, %s302_s24 }
  0x5d   : > { %p1456_p9 = scmp.ne.s32.totalorder %s302_s24, %s1455_s19  ;;  %p1464_p2 = scmp.lt.s32.totalorder %s1455_s19, %s1455_s19 }
  0x5f   : > { %p1458_p12 = pnand %p1456_p9, %p1772_p13  ;;  %p1465_p4 = por %p1464_p2, %p1463_p1 }
  0x61   : > { %p1459_p0 = pneg %p1458_p12 }
  0x63   : > { %p1466_p8 = pnand %p1465_p4, %p1459_p0 }
  0x65   : > { %1469 = shalt.err (!%p1466_p8)
}
  0x66   : > { %1285 = dma.hbm_to_vmem [thread:$0]  (!%p1756_p11), %s2107_s5, 1024, %s302_s24, [#allocation9], %s2118_s25, %s2118_s25, %s2120_s26  }
  0x67   : > { %s1647_s30 = smov [#allocation11]   ;;  %s1470_s29 = scalar_lea.hbm %s2109_s7, 1024 }
  0x68   : > { %s317_s16 = sshll.u32 %s1647_s30, 4  ;;  %p1471_p4 = scmp.ne.s32.totalorder %s2109_s7, %s1470_s29  ;;  %s318_s16 = int_to_ptr.vmem [resolvable:$true] %s317_s16 }
  0x69   : > { %p1477_p10 = scmp.lt.u32.totalorder %s1470_s29, %s2109_s7 }
  0x6a   : > { %p1473_p8 = pnand %p1471_p4, %p1772_p13 }
  0x6c   : > { %p1474_p6 = pneg %p1473_p8 }
  0x6e   : > { %p1479_p3 = pnand %p1477_p10, %p1474_p6 }
  0x70   : > { %1482 = shalt.err (!%p1479_p3)
}
  0x71   : > { %s1483_s24 = scalar_lea.vmem %s318_s16, 1024  ;;  %p1491_p12 = scmp.lt.s32.totalorder %s318_s16, %s318_s16 }
  0x72   : > { %p1484_p5 = scmp.ne.s32.totalorder %s318_s16, %s1483_s24  ;;  %p1492_p0 = scmp.lt.s32.totalorder %s1483_s24, %s1483_s24 }
  0x74   : > { %p1486_p7 = pnand %p1484_p5, %p1772_p13  ;;  %p1493_p1 = por %p1492_p0, %p1491_p12 }
  0x76   : > { %p1487_p9 = pneg %p1486_p7 }
  0x78   : > { %p1494_p2 = pnand %p1493_p1, %p1487_p9 }
  0x7a   : > { %1497 = shalt.err (!%p1494_p2)
}
  0x7b   : > { %1288 = dma.hbm_to_vmem [thread:$0]  (!%p1756_p11), %s2109_s7, 1024, %s318_s16, [#allocation12], %s2118_s25, %s2118_s25, %s2120_s26  }
  0x7c   : > { %s1866_s14 = sadd.s32 1, %s1640_s12   ;;  %s37_s20 = sadd.s32 1, %s1636_s11 }
  0x7d   : > { %s34_s30 = ssub.s32 %s1640_s12, %s1866_s14  ;;  %p44_p13 = scmp.ne.s32.totalorder %s1636_s11, %s1632_s10 }
  0x7e   : > { %p35_p4 = scmp.eq.s32.totalorder %s34_s30, 0  ;;  %p45_p8 = scmp.eq.s32.totalorder %s1640_s12, 0 }
  0x7f   : > { %p2135_p6 = scmp.eq.s32.totalorder %s1726_s13, 1  ;;  %p1304_p3 = scmp.lt.s32.totalorder %s1640_s12, 2 }
  0x80   : > { %s1882_s28 = scalar_select %p35_p4, %s1636_s11, %s37_s20  }
  0x81   : > { %p1876_p10 = por %p2135_p6, %p44_p13  ;;  %p46_p5 = por %p45_p8, %p44_p13 }
  0x82   : > { %s334_s29 = sand.u32 1, %s1636_s11   ;;  %s1135_s16 = sshll.u32 %s1640_s12, 7 }
  0x83   : > { %s1079_s18 = sshll.u32 %s334_s29, 3  ;;  %s2137_s0 = sld [smem:[#allocation22_spill]] }
  0x84   : > { %s338_s24 = scalar_lea.vmem [#allocation2], %s1079_s18  ;;  %p1893_p11 = pnand %p1304_p3, %p46_p5 }
  0x85   : > { %s345_s22 = sshll.u32 %s338_s24, 4  ;;  %s1900_s21 = scalar_lea.hbm %s2103_s1, %s1135_s16  ;;  %s1891_s22 = int_to_ptr.vmem [resolvable:$true] %s345_s22 }
  0x86   : > { %s359_s23 = scalar_lea.vmem [#allocation5], %s1079_s18  ;;  %s1904_s26 = scalar_lea.sflag [#allocation3], %s334_s29 }
  0x87   : > { %s1902_s25 = sshll.u32 %s359_s23, 4  ;;  %p1500_p9 = pneg %p1893_p11  ;;  %s1936_s25 = int_to_ptr.vmem [resolvable:$true] %s1902_s25 }
  0x89   : > { %s1889_s19 = scalar_lea.hbm %s2137_s0, %s1135_s16  ;;  %s1503_s20 = scalar_lea.hbm %s2137_s0, 256 }
  0x8a   : > { %s1498_s24 = scalar_lea.hbm %s1889_s19, 128  ;;  %p1504_p1 = scmp.lt.u32.totalorder %s1889_s19, %s2137_s0 }
  0x8b   : > { %p1499_p7 = scmp.ne.s32.totalorder %s1889_s19, %s1498_s24  ;;  %p1505_p2 = scmp.lt.u32.totalorder %s1503_s20, %s1498_s24 }
  0x8c   : > { %p1507_p4 = scmp.lt.u32.totalorder %s1498_s24, %s1889_s19 }
  0x8d   : > { %p1501_p12 = pnand %p1500_p9, %p1499_p7  ;;  %p1506_p13 = por %p1505_p2, %p1504_p1 }
  0x8f   : > { %p1502_p0 = pneg %p1501_p12  ;;  %p1508_p8 = por %p1507_p4, %p1506_p13 }
  0x91   : > { %p1509_p6 = pnand %p1508_p8, %p1502_p0 }
  0x93   : > { %1512 = shalt.err (!%p1509_p6)
}
  0x94   : > { %s1513_s29 = scalar_lea.vmem %s1891_s22, 128  ;;  %s1648_s2 = smov [#allocation2]  }
  0x95   : > { %p1514_p3 = scmp.ne.s32.totalorder %s1891_s22, %s1513_s29  ;;  %s1518_s3 = sshll.u32 %s1648_s2, 4  ;;  %s1519_s3 = int_to_ptr.vmem [resolvable:$false] %s1518_s3 }
  0x96   : > { %s1520_s18 = scalar_lea.vmem %s1519_s3, 256  ;;  %p1521_p12 = scmp.lt.s32.totalorder %s1891_s22, %s1519_s3 }
  0x97   : > { %p1516_p5 = pnand %p1514_p3, %p1500_p9  ;;  %p1522_p1 = scmp.lt.s32.totalorder %s1520_s18, %s1513_s29 }
  0x99   : > { %p1517_p7 = pneg %p1516_p5  ;;  %p1523_p2 = por %p1522_p1, %p1521_p12 }
  0x9b   : > { %p1524_p13 = pnand %p1523_p2, %p1517_p7 }
  0x9d   : > { %1527 = shalt.err (!%p1524_p13)
}
  0x9e   : > { %s2139_s23 = smov 4   ;;  %s2140_s24 = smov 64  }
  0x9f   : > { %1292 = dma.hbm_to_vmem [thread:$0]  (!%p1893_p11), %s1889_s19, 128, %s1891_s22, %s1904_s26, %s2140_s24, %s2140_s24, %s2139_s23  }
  0xa0   : > { %s355_s20 = sand.u32 1, %s1640_s12   ;;  %s1528_s16 = scalar_lea.hbm %s1900_s21, 128 }
  0xa1   : > { %s1939_s30 = scalar_lea.sflag [#allocation6], %s355_s20  ;;  %p1529_p0 = scmp.ne.s32.totalorder %s1900_s21, %s1528_s16 }
  0xa2   : > { %s1533_s3 = scalar_lea.hbm %s2103_s1, 256  ;;  %p1534_p6 = scmp.lt.u32.totalorder %s1900_s21, %s2103_s1 }
  0xa3   : > { %p1531_p4 = pnand %p1529_p0, %p1500_p9  ;;  %p1535_p3 = scmp.lt.u32.totalorder %s1533_s3, %s1528_s16 }
  0xa4   : > { %p1537_p7 = scmp.lt.u32.totalorder %s1528_s16, %s1900_s21 }
  0xa5   : > { %p1532_p8 = pneg %p1531_p4  ;;  %p1536_p5 = por %p1535_p3, %p1534_p6 }
  0xa7   : > { %p1538_p12 = por %p1537_p7, %p1536_p5 }
  0xa9   : > { %p1539_p1 = pnand %p1538_p12, %p1532_p8 }
  0xab   : > { %1542 = shalt.err (!%p1539_p1)
}
  0xac   : > { %s1543_s26 = scalar_lea.vmem %s1936_s25, 128  ;;  %s1649_s19 = smov [#allocation5]  }
  0xad   : > { %p1544_p2 = scmp.ne.s32.totalorder %s1936_s25, %s1543_s26  ;;  %s1548_s22 = sshll.u32 %s1649_s19, 4  ;;  %s1549_s22 = int_to_ptr.vmem [resolvable:$false] %s1548_s22 }
  0xae   : > { %s1550_s0 = scalar_lea.vmem %s1549_s22, 256  ;;  %p1551_p4 = scmp.lt.s32.totalorder %s1936_s25, %s1549_s22 }
  0xaf   : > { %p1546_p13 = pnand %p1544_p2, %p1500_p9  ;;  %p1552_p6 = scmp.lt.s32.totalorder %s1550_s0, %s1543_s26 }
  0xb1   : > { %p1547_p0 = pneg %p1546_p13  ;;  %p1553_p3 = por %p1552_p6, %p1551_p4 }
  0xb3   : > { %p1554_p5 = pnand %p1553_p3, %p1547_p0 }
  0xb5   : > { %1557 = shalt.err (!%p1554_p5)
}
  0xb6   : > { %1295 = dma.hbm_to_vmem [thread:$0]  (!%p1893_p11), %s1900_s21, 128, %s1936_s25, %s1939_s30, %s2140_s24, %s2140_s24, %s2139_s23  }
  0xb7   : > { %p2141_p9 = scmp.ne.s32.totalorder %s2130_s17, 0 }
  0xb8   : > { %s1971_s20 = sand.u32 (!%p2141_p9), 1, %s1632_s10   ;;  %p2142_p8 = scmp.ne.s32.totalorder (!%p2141_p9), %s2127_s15, 0 }
  0xb9   : > { %378 = sbr.rel (%p2141_p9) target bundleno = 917 (0x395), region = 56  ;;  %s1086_s16 = sshll.u32 (!%p2141_p9), %s1971_s20, 3 }
  0xba   : > { %s381_s29 = scalar_lea.sflag (!%p2141_p9), [#allocation3], %s1971_s20  ;;  %s1975_s2 = scalar_lea.vmem (!%p2141_p9), [#allocation2], %s1086_s16 }
  0xc0   : > { %1603 = dma.done.wait (%p2142_p8), %s381_s29, 128  }
  0xc1   : > { %1605 = vsyncadd (%p2142_p8), %s381_s29, 4294967168  ;;  %s389_s25 = sand.u32 1, %s1726_s13   ;;  %s1982_s9 = scalar_lea.vmem [#allocation5], %s1086_s16 }
  0xc2   : > { %s390_s17 = scalar_lea.sflag [#allocation6], %s389_s25 }
  0xc3   : > { %1607 = dma.done.wait (%p2142_p8), %s390_s17, 128  }
  0xc4   : > { %1609 = vsyncadd (%p2142_p8), %s390_s17, 4294967168  ;;  %p2143_p11 = scmp.eq.s32.totalorder %s1726_s13, 0 }
  0xc6   : > { %1611 = dma.done.wait (%p2143_p11), [#allocation6], 1024   ;;  %p2144_p7 = pmov %p2143_p11 }
  0xc8   : > { %1613 = vsyncadd (%p2144_p7), [#allocation6], 4294966272  ;;  %p2145_p12 = pmov %p2144_p7 }
  0xc9   : > { %p2146_p1 = pmov %p2144_p7 }
  0xca   : > { %1615 = dma.done.wait (%p2145_p12), [#allocation9], 2048  }
  0xcb   : > { %1617 = vsyncadd (%p2146_p1), [#allocation9], 4294965248  ;;  %p2147_p2 = pmov %p2146_p1 }
  0xcc   : > { %p2148_p13 = pmov %p2146_p1 }
  0xcd   : > { %1619 = dma.done.wait (%p2147_p2), [#allocation12], 1024  }
  0xce   : > { %1621 = vsyncadd (%p2148_p13), [#allocation12], 4294966272  ;;  %v1650_v0 = vmov 0.0   ;;  %vm1651_vm0 = vmmov 0   ;;  %v1352_v1 = vld [vmem:[#allocation8] sm:$0xff]   ;;  %v1354_v3 = vld [vmem:[#allocation8 + $0x8] sm:$0xff]  }
  0xcf   : > { %1174 = vmatprep.subr.bf16.mxu0 %v1650_v0  ;;  %1194 = vmatprep.subr.bf16.mxu1 %v1650_v0  ;;  %v1353_v2 = vld [vmem:[#allocation7] sm:$0xff]   ;;  %v1355_v4 = vld [vmem:[#allocation7 + $0x8] sm:$0xff]   ;;  %v1356_v5 = vld [vmem:[#allocation8 + $0x10] sm:$0xff]   ;;  %s1092_s30 = sshll.u32 %s1971_s20, 4  ;;  %s1137_s22 = sshll.u32 %s1726_s13, 8 }
  0xd0   : > { %1190 = vmatprep.mubr.msk.bf16.mxu0 %vm1651_vm0, %v1650_v0  ;;  %1210 = vmatprep.mubr.msk.bf16.mxu1 %vm1651_vm0, %v1650_v0  ;;  %v1357_v6 = vld [vmem:[#allocation7 + $0x10] sm:$0xff]   ;;  %v1358_v7 = vld [vmem:[#allocation8 + $0x18] sm:$0xff]   ;;  %v1360_v9 = vld [vmem:[#allocation8 + $0x20] sm:$0xff]   ;;  %s448_s26 = scalar_lea.vmem [#allocation13], %s1092_s30  ;;  %s2149_s29 = sld [smem:[#allocation25_spill]] }
  0xd1   : > { %1175 = vmatpush3.bf16.msra.mxu0 %v1352_v1  ;;  %1195 = vmatpush3.bf16.msra.mxu1 %v1353_v2  ;;  %v1359_v8 = vld [vmem:[#allocation7 + $0x18] sm:$0xff]   ;;  %v1361_v10 = vld [vmem:[#allocation7 + $0x20] sm:$0xff]   ;;  %v1362_v11 = vld [vmem:[#allocation8 + $0x28] sm:$0xff]   ;;  %s938_s19 = sshll.u32 %s448_s26, 4  ;;  %s925_s25 = scalar_lea.sflag [#allocation4], %s1971_s20  ;;  %s2053_s19 = int_to_ptr.vmem [resolvable:$true] %s938_s19 }
  0xd2   : > { %1176 = vmatprep.subr.bf16.mxu0 %v1650_v0  ;;  %1196 = vmatprep.subr.bf16.mxu1 %v1650_v0  ;;  %v1363_v12 = vld [vmem:[#allocation7 + $0x28] sm:$0xff]   ;;  %v1364_v13 = vld [vmem:[#allocation8 + $0x30] sm:$0xff]   ;;  %v1366_v15 = vld [vmem:[#allocation8 + $0x38] sm:$0xff]   ;;  %s1558_s17 = scalar_lea.vmem %s2053_s19, 256  ;;  %s1652_s13 = smov [#allocation13]  }
  0xd3   : > { %v1365_v14 = vld [vmem:[#allocation7 + $0x30] sm:$0xff]   ;;  %v1367_v16 = vld [vmem:[#allocation7 + $0x38] sm:$0xff]   ;;  %v1369_v18 = vld [vmem:[%s1975_s2] sm:$0xff]   ;;  %p1559_p0 = scmp.ne.s32.totalorder %s2053_s19, %s1558_s17 }
  0xd4   : > { %v1368_v17 = vld [vmem:[%s1982_s9] sm:$0xff]   ;;  %v1370_v19 = vld [vmem:[#allocation10] sm:$0xff]   ;;  %v1371_v20 = vld [vmem:[#allocation10 + $0x8] sm:$0xff]   ;;  %s1562_s9 = sshll.u32 %s1652_s13, 4  ;;  %s1563_s9 = int_to_ptr.vmem [resolvable:$false] %s1562_s9 }
  0xd5   : > { %1177 = vmatpush3.bf16.msra.mxu0 %v1354_v3  ;;  %1197 = vmatpush3.bf16.msra.mxu1 %v1355_v4  ;;  %v1372_v21 = vld [vmem:[#allocation10 + $0x10] sm:$0xff]   ;;  %v1373_v22 = vld [vmem:[#allocation10 + $0x18] sm:$0xff]   ;;  %v1374_v23 = vld [vmem:[#allocation10 + $0x20] sm:$0xff]   ;;  %p1560_p4 = pnand %p1559_p0, %p1876_p10  ;;  %s1564_s15 = scalar_lea.vmem %s1563_s9, 512 }
  0xd6   : > { %1178 = vmatprep.subr.bf16.mxu0 %v1650_v0  ;;  %1198 = vmatprep.subr.bf16.mxu1 %v1650_v0  ;;  %v1375_v24 = vld [vmem:[#allocation10 + $0x28] sm:$0xff]   ;;  %v1376_v25 = vld [vmem:[#allocation10 + $0x30] sm:$0xff]   ;;  %v1377_v26 = vld [vmem:[#allocation10 + $0x38] sm:$0xff]   ;;  %s2058_s2 = scalar_lea.hbm %s2149_s29, %s1137_s22  ;;  %p1565_p3 = scmp.lt.s32.totalorder %s2053_s19, %s1563_s9 }
  0xd7   : > { %v1378_v27 = vld [vmem:[#allocation11] sm:$0xff]   ;;  %v1379_v28 = vld [vmem:[#allocation11 + $0x8] sm:$0xff]   ;;  %v1380_v29 = vld [vmem:[#allocation11 + $0x10] sm:$0xff]   ;;  %p1561_p6 = pneg %p1560_p4  ;;  %p1566_p5 = scmp.lt.s32.totalorder %s1564_s15, %s1558_s17 }
  0xd8   : > { %v1381_v30 = vld [vmem:[#allocation11 + $0x18] sm:$0xff]   ;;  %v1382_v31 = vld [vmem:[#allocation11 + $0x20] sm:$0xff]   ;;  %v1383_v32 = vld [vmem:[#allocation11 + $0x28] sm:$0xff]  }
  0xd9   : > { %1179 = vmatpush3.bf16.msra.mxu0 %v1356_v5  ;;  %1199 = vmatpush3.bf16.msra.mxu1 %v1357_v6  ;;  %v1111_v35 = vld [vmem:[%s2106_s4] ss:$0 sm:$0xff]  ;;  %v1384_v49 = vld [vmem:[#allocation11 + $0x30] sm:$0xff]   ;;  %v1385_v50 = vld [vmem:[#allocation11 + $0x38] sm:$0xff]   ;;  %p1567_p9 = por %p1566_p5, %p1565_p3 }
  0xda   : > { %1180 = vmatprep.subr.bf16.mxu0 %v1650_v0  ;;  %1200 = vmatprep.subr.bf16.mxu1 %v1650_v0  ;;  %v1112_v51 = vld [vmem:[%s2108_s6] ss:$0 sm:$0xff] }
  0xdb   : > { %v1121_v61 = vld [vmem:[%s2110_s8] ss:$0 sm:$0xff]  ;;  %p1568_p8 = pnand %p1567_p9, %p1561_p6 }
  0xdd   : > { %1181 = vmatpush3.bf16.msra.mxu0 %v1358_v7  ;;  %1201 = vmatpush3.bf16.msra.mxu1 %v1359_v8 }
  0xde   : > { %1182 = vmatprep.subr.bf16.mxu0 %v1650_v0  ;;  %1202 = vmatprep.subr.bf16.mxu1 %v1650_v0 }
  0xe1   : > { %1183 = vmatpush3.bf16.msra.mxu0 %v1360_v9  ;;  %1203 = vmatpush3.bf16.msra.mxu1 %v1361_v10 }
  0xe2   : > { %1184 = vmatprep.subr.bf16.mxu0 %v1650_v0  ;;  %1204 = vmatprep.subr.bf16.mxu1 %v1650_v0 }
  0xe5   : > { %1185 = vmatpush3.bf16.msra.mxu0 %v1362_v11  ;;  %1205 = vmatpush3.bf16.msra.mxu1 %v1363_v12 }
  0xe6   : > { %1186 = vmatprep.subr.bf16.mxu0 %v1650_v0  ;;  %1206 = vmatprep.subr.bf16.mxu1 %v1650_v0 }
  0xe9   : > { %1187 = vmatpush3.bf16.msra.mxu0 %v1364_v13  ;;  %1207 = vmatpush3.bf16.msra.mxu1 %v1365_v14 }
  0xea   : > { %1188 = vmatprep.subr.bf16.mxu0 %v1650_v0  ;;  %1208 = vmatprep.subr.bf16.mxu1 %v1650_v0 }
  0xed   : > { %1189 = vmatpush3.bf16.msra.mxu0 %v1366_v15  ;;  %1209 = vmatpush3.bf16.msra.mxu1 %v1367_v16 }
  0xee   : > { %1214 = vmatprep.subr.bf16.mxu0 %v1650_v0  ;;  %1234 = vmatprep.subr.bf16.mxu1 %v1650_v0 }
  0xf0   : > { %1191 = vmatmul.mubr.bf16.vlgmr.msra.gmra.mrb[0].mxu0 %v1368_v17  ;;  %1211 = vmatmul.mubr.bf16.vlgmr.msra.gmra.mrb[0].mxu1 %v1369_v18 }
  0xf1   : > { %1215 = vmatpush3.bf16.msra.mxu0 %v1370_v19  ;;  %1230 = vmatprep.mubr.msk.bf16.mxu0 %vm1651_vm0, %v1650_v0 }
  0xf2   : > { %1216 = vmatprep.subr.bf16.mxu0 %v1650_v0  ;;  %1250 = vmatprep.mubr.msk.bf16.mxu1 %vm1651_vm0, %v1650_v0 }
  0xf3   : > { %1235 = vmatpush3.bf16.msra.mxu1 %v1378_v27 }
  0xf4   : > { %1236 = vmatprep.subr.bf16.mxu1 %v1650_v0 }
  0xf5   : > { %1217 = vmatpush3.bf16.msra.mxu0 %v1371_v20 }
  0xf6   : > { %1218 = vmatprep.subr.bf16.mxu0 %v1650_v0 }
  0xf7   : > { %1237 = vmatpush3.bf16.msra.mxu1 %v1379_v28 }
  0xf8   : > { %1238 = vmatprep.subr.bf16.mxu1 %v1650_v0 }
  0xf9   : > { %1219 = vmatpush3.bf16.msra.mxu0 %v1372_v21 }
  0xfa   : > { %1220 = vmatprep.subr.bf16.mxu0 %v1650_v0 }
  0xfb   : > { %1239 = vmatpush3.bf16.msra.mxu1 %v1380_v29 }
  0xfc   : > { %1240 = vmatprep.subr.bf16.mxu1 %v1650_v0 }
  0xfd   : > { %1221 = vmatpush3.bf16.msra.mxu0 %v1373_v22 }
  0xfe   : > { %1222 = vmatprep.subr.bf16.mxu0 %v1650_v0 }
  0xff   : > { %1241 = vmatpush3.bf16.msra.mxu1 %v1381_v30 }
 0x100   : > { %1242 = vmatprep.subr.bf16.mxu1 %v1650_v0 }
 0x101   : > { %1223 = vmatpush3.bf16.msra.mxu0 %v1374_v23 }
 0x102   : > { %1224 = vmatprep.subr.bf16.mxu0 %v1650_v0 }
 0x103   : > { %1243 = vmatpush3.bf16.msra.mxu1 %v1382_v31 }
 0x104   : > { %1244 = vmatprep.subr.bf16.mxu1 %v1650_v0 }
 0x105   : > { %1225 = vmatpush3.bf16.msra.mxu0 %v1375_v24 }
 0x106   : > { %1226 = vmatprep.subr.bf16.mxu0 %v1650_v0 }
 0x107   : > { %1245 = vmatpush3.bf16.msra.mxu1 %v1383_v32 }
 0x108   : > { %1246 = vmatprep.subr.bf16.mxu1 %v1650_v0 }
 0x109   : > { %1227 = vmatpush3.bf16.msra.mxu0 %v1376_v25 }
 0x10a   : > { %1228 = vmatprep.subr.bf16.mxu0 %v1650_v0 }
 0x10b   : > { %1247 = vmatpush3.bf16.msra.mxu1 %v1384_v49 }
 0x10c   : > { %1248 = vmatprep.subr.bf16.mxu1 %v1650_v0 }
 0x10d   : > { %1229 = vmatpush3.bf16.msra.mxu0 %v1377_v26 }
 0x10f   : > { %1249 = vmatpush3.bf16.msra.mxu1 %v1385_v50 }
 0x1c3   : > { %v577_v33 = vpop.f32.mrb[0].mxu0  ;;  %v672_v34 = vpop.f32.mrb[0].mxu1 }
 0x1c4   : > { %v1192_v36 = vpop.f32.mrb[1].mxu0  ;;  %v673_v37 = vadd.f32 %v672_v34, %v577_v33  ;;  %v1212_v38 = vpop.f32.mrb[1].mxu1 }
 0x1c5   : > { %v580_v39 = vpop.f32.mrb[2].mxu0  ;;  %v675_v40 = vpop.f32.mrb[2].mxu1 }
 0x1c6   : > { %v1193_v41 = vpop.f32.mrb[3].mxu0  ;;  %v686_v42 = vadd.f32 %v1111_v35, %v673_v37  ;;  %v676_v43 = vadd.f32 %v675_v40, %v580_v39  ;;  %v1213_v44 = vpop.f32.mrb[3].mxu1 }
 0x1c8   : > { %v687_v45 = vadd.f32 %v1111_v35, %v676_v43  ;;  %v688_v46 = vmax.f32 %v686_v42, 0.0 }
 0x1ca   : > { %v689_v47 = vmax.f32 %v687_v45, 0.0 }
 0x1cc   : > { %v707_v48 = vpack.c.bf16 %v689_v47, %v688_v46 }
 0x1ce   : > { %1231 = vmatmul.mubr.bf16.vlgmr.msra.gmra.mrb[4].mxu0 %v707_v48 }
 0x2a1   : > { %v796_v52 = vpop.f32.mrb[4].mxu0 }
 0x2a2   : > { %v797_v53 = vadd.f32 %v1112_v51, %v796_v52  ;;  %v1232_v54 = vpop.f32.mrb[5].mxu0 }
 0x2a3   : > { %v799_v55 = vpop.f32.mrb[6].mxu0 }
 0x2a4   : > { %v800_v56 = vadd.f32 %v1112_v51, %v799_v55  ;;  %v1233_v57 = vpop.f32.mrb[7].mxu0  ;;  %v803_v58 = vmax.f32 %v797_v53, 0.0 }
 0x2a6   : > { %v804_v59 = vmax.f32 %v800_v56, 0.0 }
 0x2a8   : > { %v805_v60 = vpack.c.bf16 %v804_v59, %v803_v58 }
 0x2aa   : > { %1251 = vmatmul.mubr.bf16.vlgmr.msra.gmra.mrb[4].mxu1 %v805_v60 }
 0x37d   : > { %v911_v62 = vpop.f32.mrb[4].mxu1 }
 0x37e   : > { %v912_v63 = vadd.f32 %v1121_v61, %v911_v62  ;;  %v1252_v0 = vpop.f32.mrb[5].mxu1 }
 0x37f   : > { %v914_v1 = vpop.f32.mrb[6].mxu1 }
 0x380   : > { %v918_v2 = vmax.f32 %v912_v63, 0.05  ;;  %v915_v3 = vadd.f32 %v1121_v61, %v914_v1  ;;  %v1253_v4 = vpop.f32.mrb[7].mxu1 }
 0x382   : > { %v920_v5 = vmin.f32 %v918_v2, 1e+09  ;;  %v919_v6 = vmax.f32 %v915_v3, 0.05 }
 0x384   : > { %922 = vst [vmem:[%s448_s26] sm:$0xff] %v920_v5  ;;  %v921_v7 = vmin.f32 %v919_v6, 1e+09 }
 0x386   : > { %923 = vst [vmem:[%s448_s26 + $0x8] sm:$0xff] %v921_v7 }
 0x387   : > { %1571 = shalt.err (!%p1568_p8)
}
 0x388   : > { %s1572_s21 = scalar_lea.hbm %s2058_s2, 256  ;;  %s1576_s30 = scalar_lea.hbm %s2149_s29, 512 }
 0x389   : > { %p1573_p11 = scmp.ne.s32.totalorder %s2058_s2, %s1572_s21  ;;  %p1577_p1 = scmp.lt.u32.totalorder %s2058_s2, %s2149_s29 }
 0x38a   : > { %p1578_p2 = scmp.lt.u32.totalorder %s1576_s30, %s1572_s21  ;;  %p1580_p0 = scmp.lt.u32.totalorder %s1572_s21, %s2058_s2 }
 0x38b   : > { %p1574_p7 = pnand %p1573_p11, %p1876_p10 }
 0x38c   : > { %p1579_p13 = por %p1578_p2, %p1577_p1 }
 0x38d   : > { %p1575_p12 = pneg %p1574_p7 }
 0x38e   : > { %p1581_p4 = por %p1580_p0, %p1579_p13 }
 0x390   : > { %p1582_p6 = pnand %p1581_p4, %p1575_p12 }
 0x392   : > { %1585 = shalt.err (!%p1582_p6)
}
 0x393   : > { %s1653_s26 = smov 128   ;;  %s1654_s22 = smov 8  }
 0x394   : > { %1274 = dma.vmem_to_hbm [thread:$0]  (%p1876_p10), %s2053_s19, 256, %s2058_s2, %s925_s25, %s1653_s26, %s1653_s26, %s1654_s22  }
 0x395 PF: > { %s2150_s0 = sld [smem:[#allocation20_spill]]  ;;  %s2151_s16 = sld [smem:[#allocation21_spill]] }
 0x396   : > { %p2153_p5 = scmp.ge.s32.totalorder %s1640_s12, 2 }
 0x39b   : > { %s953_s17 = sand.u32 1, %s2150_s0   ;;  %p2152_p3 = scmp.ne.s32.totalorder %s2151_s16, 0 }
 0x39c   : > { %s954_s13 = scalar_lea.sflag [#allocation4], %s953_s17 }
 0x39d   : > { %p1297_p9 = pnand %p2153_p5, %p2152_p3 }
 0x39f   : > { %1623 = dma.done.wait (!%p1297_p9), %s954_s13, 256  }
 0x3a0   : > { %1625 = vsyncadd (!%p1297_p9), %s954_s13, 4294967040  ;;  %p27_p8 = scmp.ge.s32.totalorder %s1866_s14, 4   ;;  %s2154_s30 = smov %s1632_s10 }
 0x3a1   : > { %s2155_s10 = smov %s1636_s11  ;;  %s2156_s11 = smov %s1882_s28 }
 0x3a2   : > { %s2157_s12 = smov %s1866_s14  ;;  %29 = sbr.rel (!%p27_p8) target bundleno = 14 (0xe), region = 130 }
 0x3a9   :  { %959 = vsyncpa [#allocation3], 1 }
 0x3aa   :  { %961 = vsyncpa [#allocation3 + $0x1], 1 }
 0x3ab   :  { %962 = vsyncpa [#allocation6], 1 }
 0x3ac   :  { %964 = vsyncpa [#allocation6 + $0x1], 1 }
 0x3ad   :  { %965 = vsyncpa [#allocation9], 1 }
 0x3ae   :  { %966 = vsyncpa [#allocation12], 1 }
 0x3af   :  { %967 = vsyncpa [#allocation4], 1 }
 0x3b0   :  { %969 = vsyncpa [#allocation4 + $0x1], 1 }

</bundles_post_ra>
